<compile_context>
chip_gen: v5e
topology: v5e:2x2
jax: 0.10.0
libtpu: 0.0.40
codegen_flags: <defaults>
</compile_context>

<pallas_src>
import math

import jax
import jax.numpy as jnp
import numpy as np
from jax import lax
from jax.experimental import pallas as pl
from jax.experimental.pallas import tpu as pltpu

# ---- problem sizes (consistent with the module defaults) ---------------------
N = 2            # batch
C_IN = 4         # num_channels
L = 16           # sequence length
F = 256          # num_filters
K = 2            # kernel_size
NUM_CLASSES = 5
LANES = 128      # fc output padded to one full lane group

M = N * L        # flattened (batch*time) rows

# The strided-validity scheme assumes L is a power of two (row -> time decode via
# `& (L-1)`) and divisible by 4 (two stride-2 maxpools), and N <= 8 (the fc rows
# are compacted into a single 8-row slab).
assert L >= 4 and (L & (L - 1)) == 0
assert N <= 8


# ----------------------------- Pallas kernel ---------------------------------
def fpl_kernel(x_ref, e0w, e0b, e1w, e1b, d0w, d0b, d1w, d1b, fcw, fcb, out_ref):
    # Per-row time index within each batch element, kept (M, 1): the predicates
    # lane-broadcast for free inside jnp.where (no (M, F) iota / wide masks).
    t = lax.broadcasted_iota(jnp.int32, (M, 1), 0) & (L - 1)
    last_s1 = t == (L - 1)      # stride-1 conv: x[t+1] tap is the zero pad here
    last_s2 = t == (L - 2)      # stride-2 convs
    last_s4 = t == (L - 4)      # stride-4 conv
    up_odd = (t & 3) == 2       # rows taking the duplicated nearest-upsample copy

    def shifted(v, k, last_mask=None):
        # Value at row r+k as a register-level roll of the live value (no VMEM
        # round trip).  Wrap-around / cross-batch rows are either zeroed by
        # `last_mask` or only ever land on rows that are invalid at the current
        # stride, so they never leak into a valid row.
        r = jnp.roll(v, -k, axis=0)
        return r if last_mask is None else jnp.where(last_mask, 0.0, r)

    def conv(x0, x1, w_ref, b_ref):
        # Conv1d(k=2, 'same') as one fused bf16 MXU matmul, f32 accumulation.
        a = jnp.concatenate(
            [x0.astype(jnp.bfloat16), x1.astype(jnp.bfloat16)], axis=-1)
        return jnp.dot(a, w_ref[...], preferred_element_type=jnp.float32) + b_ref[...]

    x = x_ref[...]                                                  # (M, C_IN)

    # encoder conv 0 + relu (stride-1 validity)
    h0 = jnp.maximum(conv(x, shifted(x, 1, last_s1), e0w, e0b), 0.0)
    # maxpool 1 -> valid rows: t even
    p1 = jnp.maximum(h0, shifted(h0, 1))
    # encoder conv 1 + relu (stride-2 validity)
    h1 = jnp.maximum(conv(p1, shifted(p1, 2, last_s2), e1w, e1b), 0.0)
    # maxpool 2 -> valid rows: t % 4 == 0
    p2 = jnp.maximum(h1, shifted(h1, 2))
    # decoder conv 0 (NO relu, matches torch forward; stride-4 validity)
    g0 = conv(p2, shifted(p2, 4, last_s4), d0w, d0b)
    # nearest upsample x2: stride-4 -> stride-2 validity
    u0 = jnp.where(up_odd, shifted(g0, -2), g0)
    # decoder conv 1 (NO relu; stride-2 validity)
    g1 = conv(u0, shifted(u0, 2, last_s2), d1w, d1b)

    # Compact the fc rows (t = L-2 of every batch; the last nearest upsample
    # duplicates them into t = L-1) into rows 0..N-1 of one 8-row slab, then run
    # fc + softmax on that slab only and emit one unmasked lane-dense store.
    row8 = lax.broadcasted_iota(jnp.int32, (8, 1), 0)
    slab = shifted(g1, L - 2)[:8, :]                                # row 0 <- g1[L-2]
    for n in range(1, N):
        slab = jnp.where(row8 == n,
                         shifted(g1, n * (L - 1) + (L - 2))[:8, :], slab)

    logits = jnp.dot(slab.astype(jnp.bfloat16), fcw[...],
                     preferred_element_type=jnp.float32) + fcb[...]  # (8, 128)
    mx = jnp.max(logits, axis=-1, keepdims=True)
    e = jnp.exp(logits - mx)                    # pad lanes carry -1e30 bias -> exp == 0
    out_ref[...] = e / jnp.sum(e, axis=-1, keepdims=True)


# ----------------------------- wrapper ---------------------------------------
def pack_params(params):
    """One-time weight packing (OUTSIDE the per-call jit): conv taps concatenated
    on K and cast to bf16; fc padded to 128 lanes (pad columns: weight 0, bias
    -1e30 so softmax sends them to exactly 0)."""
    (e0w0, e0w1, e0b, e1w0, e1w1, e1b,
     d0w0, d0w1, d0b, d1w0, d1w1, d1b, fcw, fcb) = params
    cat = lambda w0, w1: jnp.concatenate([w0, w1], axis=0).astype(jnp.bfloat16)
    fcw_pad = jnp.zeros((F, LANES), jnp.float32).at[:, :NUM_CLASSES].set(fcw)
    fcb_pad = jnp.full((1, LANES), -1e30, jnp.float32).at[:, :NUM_CLASSES].set(fcb)
    return (cat(e0w0, e0w1), e0b, cat(e1w0, e1w1), e1b,
            cat(d0w0, d0w1), d0b, cat(d1w0, d1w1), d1b,
            fcw_pad.astype(jnp.bfloat16), fcb_pad)


@jax.jit
def fpl_predictor(x_ncl, packed_params):
    """x_ncl: (N, C_IN, L) float32, PyTorch layout.  Returns (N, 5) softmax probs."""
    x = jnp.transpose(x_ncl, (0, 2, 1)).reshape(M, C_IN)   # channel-last rows
    vmem = pl.BlockSpec(memory_space=pltpu.MemorySpace.VMEM)
    probs = pl.pallas_call(
        fpl_kernel,
        out_shape=jax.ShapeDtypeStruct((8, LANES), jnp.float32),
        in_specs=[vmem] * (1 + len(packed_params)),
        out_specs=vmem,
    )(x, *packed_params)
    return probs[:N, :NUM_CLASSES]


# -------------------- deterministic parameter construction -------------------
def init_params(key):
    ks = list(jax.random.split(key, 10))

    def conv_params(k1, k2, cin, cout):
        bound = 1.0 / math.sqrt(cin * K)
        w = jax.random.uniform(k1, (cout, cin, K), jnp.float32, -bound, bound)
        b = jax.random.uniform(k2, (cout,), jnp.float32, -bound, bound)
        # split the two taps, transposed to (Cin, Cout) for x @ w
        return w[:, :, 0].T, w[:, :, 1].T, b.reshape(1, cout)

    e0 = conv_params(ks[0], ks[1], C_IN, F)
    e1 = conv_params(ks[2], ks[3], F, F)
    d0 = conv_params(ks[4], ks[5], F, F)
    d1 = conv_params(ks[6], ks[7], F, F)
    bound = 1.0 / math.sqrt(F)
    fcw = jax.random.uniform(ks[8], (NUM_CLASSES, F), jnp.float32, -bound, bound).T
    fcb = jax.random.uniform(ks[9], (1, NUM_CLASSES), jnp.float32, -bound, bound)
    return (*e0, *e1, *d0, *d1, fcw, fcb)


# --------------------------- pure-JAX reference -------------------------------
def _conv_ref(x, w0, w1, b):  # x: (N, Lx, Cin) channel-last
    xs = jnp.pad(x, ((0, 0), (0, 1), (0, 0)))[:, 1:, :]   # x[t+1], 0 at the end
    return (jnp.einsum("nlc,cf->nlf", x, w0)
            + jnp.einsum("nlc,cf->nlf", xs, w1) + b)


def forward_ref(x_ncl, params):
    (e0w0, e0w1, e0b, e1w0, e1w1, e1b,
     d0w0, d0w1, d0b, d1w0, d1w1, d1b, fcw, fcb) = params
    x = jnp.transpose(x_ncl, (0, 2, 1))
    x = jax.nn.relu(_conv_ref(x, e0w0, e0w1, e0b))
    x = x.reshape(N, x.shape[1] // 2, 2, F).max(axis=2)
    x = jax.nn.relu(_conv_ref(x, e1w0, e1w1, e1b))
    x = x.reshape(N, x.shape[1] // 2, 2, F).max(axis=2)
    x = _conv_ref(x, d0w0, d0w1, d0b)           # no relu (matches torch forward)
    x = jnp.repeat(x, 2, axis=1)
    x = _conv_ref(x, d1w0, d1w1, d1b)
    x = jnp.repeat(x, 2, axis=1)
    logits = x[:, -1, :] @ fcw + fcb[0]
    return jax.nn.softmax(logits, axis=-1)


if __name__ == "__main__":
    key = jax.random.PRNGKey(0)
    k_x, k_p = jax.random.split(key)
    x = jax.random.normal(k_x, (N, C_IN, L), jnp.float32)   # PyTorch (N, C, L)
    params = init_params(k_p)
    packed = pack_params(params)                            # packed once, reused per call

    out = jax.block_until_ready(fpl_predictor(x, packed))
    ref = jax.block_until_ready(forward_ref(x, params))

    np.testing.assert_allclose(np.asarray(out), np.asarray(ref), rtol=2e-2, atol=2e-2)
    assert out.shape == (N, NUM_CLASSES)
    np.testing.assert_allclose(np.asarray(out).sum(axis=-1), np.ones(N), atol=1e-2)

    print("KERNEL_OK")
</pallas_src>

<mosaic_0001>
module attributes {stable_mosaic.version = 11 : i64} {
  func.func @fpl_kernel(%arg0: memref<32x4xf32, #tpu.memory_space<vmem>>, %arg1: memref<8x256xbf16, #tpu.memory_space<vmem>>, %arg2: memref<1x256xf32, #tpu.memory_space<vmem>>, %arg3: memref<512x256xbf16, #tpu.memory_space<vmem>>, %arg4: memref<1x256xf32, #tpu.memory_space<vmem>>, %arg5: memref<512x256xbf16, #tpu.memory_space<vmem>>, %arg6: memref<1x256xf32, #tpu.memory_space<vmem>>, %arg7: memref<512x256xbf16, #tpu.memory_space<vmem>>, %arg8: memref<1x256xf32, #tpu.memory_space<vmem>>, %arg9: memref<256x128xbf16, #tpu.memory_space<vmem>>, %arg10: memref<1x128xf32, #tpu.memory_space<vmem>>, %arg11: memref<8x128xf32, #tpu.memory_space<vmem>>) attributes {dimension_semantics = [], scalar_prefetch = 0 : i64, scratch_operands = 0 : i64, tpu.core_type = #tpu.core_type<tc>} {
    %0 = tpu.iota {dimensions = array<i32: 0>} : vector<32x1xi32>
    %c15_i32 = arith.constant 15 : i32
    %1 = vector.broadcast %c15_i32 : i32 to vector<32x1xi32>
    %2 = arith.andi %0, %1 : vector<32x1xi32>
    %c15_i32_0 = arith.constant 15 : i32
    %3 = vector.broadcast %c15_i32_0 : i32 to vector<32x1xi32>
    %4 = arith.cmpi eq, %2, %3 : vector<32x1xi32>
    %c14_i32 = arith.constant 14 : i32
    %5 = vector.broadcast %c14_i32 : i32 to vector<32x1xi32>
    %6 = arith.cmpi eq, %2, %5 : vector<32x1xi32>
    %c12_i32 = arith.constant 12 : i32
    %7 = vector.broadcast %c12_i32 : i32 to vector<32x1xi32>
    %8 = arith.cmpi eq, %2, %7 : vector<32x1xi32>
    %c3_i32 = arith.constant 3 : i32
    %9 = vector.broadcast %c3_i32 : i32 to vector<32x1xi32>
    %10 = arith.andi %2, %9 : vector<32x1xi32>
    %c2_i32 = arith.constant 2 : i32
    %11 = vector.broadcast %c2_i32 : i32 to vector<32x1xi32>
    %12 = arith.cmpi eq, %10, %11 : vector<32x1xi32>
    %c0 = arith.constant 0 : index
    %c0_1 = arith.constant 0 : index
    %13 = vector.load %arg0[%c0, %c0_1] : memref<32x4xf32, #tpu.memory_space<vmem>>, vector<32x4xf32>
    %14 = vector.extract_strided_slice %13 {offsets = [1, 0], sizes = [31, 4], strides = [1, 1]} : vector<32x4xf32> to vector<31x4xf32>
    %15 = vector.extract_strided_slice %13 {offsets = [0, 0], sizes = [1, 4], strides = [1, 1]} : vector<32x4xf32> to vector<1x4xf32>
    %16 = tpu.concatenate %14, %15 in 0 : vector<31x4xf32>, vector<1x4xf32> -> vector<32x4xf32>
    %cst = arith.constant 0.000000e+00 : f32
    %17 = vector.shape_cast %4 : vector<32x1xi1> to vector<32x1xi1>
    %18 = vector.broadcast %17 : vector<32x1xi1> to vector<32x4xi1>
    %19 = vector.broadcast %cst : f32 to vector<32x4xf32>
    %20 = arith.select %18, %19, %16 : vector<32x4xi1>, vector<32x4xf32>
    %21 = arith.truncf %13 : vector<32x4xf32> to vector<32x4xbf16>
    %22 = arith.truncf %20 : vector<32x4xf32> to vector<32x4xbf16>
    %23 = tpu.concatenate %21, %22 in 1 : vector<32x4xbf16>, vector<32x4xbf16> -> vector<32x8xbf16>
    %c0_2 = arith.constant 0 : index
    %c0_3 = arith.constant 0 : index
    %24 = vector.load %arg1[%c0_2, %c0_3] : memref<8x256xbf16, #tpu.memory_space<vmem>>, vector<8x256xbf16>
    %cst_4 = arith.constant dense<0.000000e+00> : vector<32x256xf32>
    %25 = tpu.matmul %23, %24, %cst_4 {dimension_numbers = #tpu.dot_dimension_numbers<[1], [0], [0], [1], [0, 0, 1, 1], [], []>} : vector<32x8xbf16>, vector<8x256xbf16>, vector<32x256xf32> -> vector<32x256xf32>
    %c0_5 = arith.constant 0 : index
    %c0_6 = arith.constant 0 : index
    %26 = vector.load %arg2[%c0_5, %c0_6] : memref<1x256xf32, #tpu.memory_space<vmem>>, vector<1x256xf32>
    %27 = vector.broadcast %26 : vector<1x256xf32> to vector<32x256xf32>
    %28 = arith.addf %25, %27 : vector<32x256xf32>
    %cst_7 = arith.constant 0.000000e+00 : f32
    %29 = vector.broadcast %cst_7 : f32 to vector<32x256xf32>
    %30 = arith.maximumf %28, %29 : vector<32x256xf32>
    %31 = vector.extract_strided_slice %30 {offsets = [1, 0], sizes = [31, 256], strides = [1, 1]} : vector<32x256xf32> to vector<31x256xf32>
    %32 = vector.extract_strided_slice %30 {offsets = [0, 0], sizes = [1, 256], strides = [1, 1]} : vector<32x256xf32> to vector<1x256xf32>
    %33 = tpu.concatenate %31, %32 in 0 : vector<31x256xf32>, vector<1x256xf32> -> vector<32x256xf32>
    %34 = arith.maximumf %30, %33 : vector<32x256xf32>
    %35 = vector.extract_strided_slice %34 {offsets = [2, 0], sizes = [30, 256], strides = [1, 1]} : vector<32x256xf32> to vector<30x256xf32>
    %36 = vector.extract_strided_slice %34 {offsets = [0, 0], sizes = [2, 256], strides = [1, 1]} : vector<32x256xf32> to vector<2x256xf32>
    %37 = tpu.concatenate %35, %36 in 0 : vector<30x256xf32>, vector<2x256xf32> -> vector<32x256xf32>
    %cst_8 = arith.constant 0.000000e+00 : f32
    %38 = vector.shape_cast %6 : vector<32x1xi1> to vector<32x1xi1>
    %39 = vector.broadcast %38 : vector<32x1xi1> to vector<32x256xi1>
    %40 = vector.broadcast %cst_8 : f32 to vector<32x256xf32>
    %41 = arith.select %39, %40, %37 : vector<32x256xi1>, vector<32x256xf32>
    %42 = arith.truncf %34 : vector<32x256xf32> to vector<32x256xbf16>
    %43 = arith.truncf %41 : vector<32x256xf32> to vector<32x256xbf16>
    %44 = tpu.concatenate %42, %43 in 1 : vector<32x256xbf16>, vector<32x256xbf16> -> vector<32x512xbf16>
    %c0_9 = arith.constant 0 : index
    %c0_10 = arith.constant 0 : index
    %45 = vector.load %arg3[%c0_9, %c0_10] : memref<512x256xbf16, #tpu.memory_space<vmem>>, vector<512x256xbf16>
    %cst_11 = arith.constant dense<0.000000e+00> : vector<32x256xf32>
    %46 = tpu.matmul %44, %45, %cst_11 {dimension_numbers = #tpu.dot_dimension_numbers<[1], [0], [0], [1], [0, 0, 1, 1], [], []>} : vector<32x512xbf16>, vector<512x256xbf16>, vector<32x256xf32> -> vector<32x256xf32>
    %c0_12 = arith.constant 0 : index
    %c0_13 = arith.constant 0 : index
    %47 = vector.load %arg4[%c0_12, %c0_13] : memref<1x256xf32, #tpu.memory_space<vmem>>, vector<1x256xf32>
    %48 = vector.broadcast %47 : vector<1x256xf32> to vector<32x256xf32>
    %49 = arith.addf %46, %48 : vector<32x256xf32>
    %cst_14 = arith.constant 0.000000e+00 : f32
    %50 = vector.broadcast %cst_14 : f32 to vector<32x256xf32>
    %51 = arith.maximumf %49, %50 : vector<32x256xf32>
    %52 = vector.extract_strided_slice %51 {offsets = [2, 0], sizes = [30, 256], strides = [1, 1]} : vector<32x256xf32> to vector<30x256xf32>
    %53 = vector.extract_strided_slice %51 {offsets = [0, 0], sizes = [2, 256], strides = [1, 1]} : vector<32x256xf32> to vector<2x256xf32>
    %54 = tpu.concatenate %52, %53 in 0 : vector<30x256xf32>, vector<2x256xf32> -> vector<32x256xf32>
    %55 = arith.maximumf %51, %54 : vector<32x256xf32>
    %56 = vector.extract_strided_slice %55 {offsets = [4, 0], sizes = [28, 256], strides = [1, 1]} : vector<32x256xf32> to vector<28x256xf32>
    %57 = vector.extract_strided_slice %55 {offsets = [0, 0], sizes = [4, 256], strides = [1, 1]} : vector<32x256xf32> to vector<4x256xf32>
    %58 = tpu.concatenate %56, %57 in 0 : vector<28x256xf32>, vector<4x256xf32> -> vector<32x256xf32>
    %cst_15 = arith.constant 0.000000e+00 : f32
    %59 = vector.shape_cast %8 : vector<32x1xi1> to vector<32x1xi1>
    %60 = vector.broadcast %59 : vector<32x1xi1> to vector<32x256xi1>
    %61 = vector.broadcast %cst_15 : f32 to vector<32x256xf32>
    %62 = arith.select %60, %61, %58 : vector<32x256xi1>, vector<32x256xf32>
    %63 = arith.truncf %55 : vector<32x256xf32> to vector<32x256xbf16>
    %64 = arith.truncf %62 : vector<32x256xf32> to vector<32x256xbf16>
    %65 = tpu.concatenate %63, %64 in 1 : vector<32x256xbf16>, vector<32x256xbf16> -> vector<32x512xbf16>
    %c0_16 = arith.constant 0 : index
    %c0_17 = arith.constant 0 : index
    %66 = vector.load %arg5[%c0_16, %c0_17] : memref<512x256xbf16, #tpu.memory_space<vmem>>, vector<512x256xbf16>
    %cst_18 = arith.constant dense<0.000000e+00> : vector<32x256xf32>
    %67 = tpu.matmul %65, %66, %cst_18 {dimension_numbers = #tpu.dot_dimension_numbers<[1], [0], [0], [1], [0, 0, 1, 1], [], []>} : vector<32x512xbf16>, vector<512x256xbf16>, vector<32x256xf32> -> vector<32x256xf32>
    %c0_19 = arith.constant 0 : index
    %c0_20 = arith.constant 0 : index
    %68 = vector.load %arg6[%c0_19, %c0_20] : memref<1x256xf32, #tpu.memory_space<vmem>>, vector<1x256xf32>
    %69 = vector.broadcast %68 : vector<1x256xf32> to vector<32x256xf32>
    %70 = arith.addf %67, %69 : vector<32x256xf32>
    %71 = vector.extract_strided_slice %70 {offsets = [30, 0], sizes = [2, 256], strides = [1, 1]} : vector<32x256xf32> to vector<2x256xf32>
    %72 = vector.extract_strided_slice %70 {offsets = [0, 0], sizes = [30, 256], strides = [1, 1]} : vector<32x256xf32> to vector<30x256xf32>
    %73 = tpu.concatenate %71, %72 in 0 : vector<2x256xf32>, vector<30x256xf32> -> vector<32x256xf32>
    %74 = vector.shape_cast %12 : vector<32x1xi1> to vector<32x1xi1>
    %75 = vector.broadcast %74 : vector<32x1xi1> to vector<32x256xi1>
    %76 = arith.select %75, %73, %70 : vector<32x256xi1>, vector<32x256xf32>
    %77 = vector.extract_strided_slice %76 {offsets = [2, 0], sizes = [30, 256], strides = [1, 1]} : vector<32x256xf32> to vector<30x256xf32>
    %78 = vector.extract_strided_slice %76 {offsets = [0, 0], sizes = [2, 256], strides = [1, 1]} : vector<32x256xf32> to vector<2x256xf32>
    %79 = tpu.concatenate %77, %78 in 0 : vector<30x256xf32>, vector<2x256xf32> -> vector<32x256xf32>
    %cst_21 = arith.constant 0.000000e+00 : f32
    %80 = vector.shape_cast %6 : vector<32x1xi1> to vector<32x1xi1>
    %81 = vector.broadcast %80 : vector<32x1xi1> to vector<32x256xi1>
    %82 = vector.broadcast %cst_21 : f32 to vector<32x256xf32>
    %83 = arith.select %81, %82, %79 : vector<32x256xi1>, vector<32x256xf32>
    %84 = arith.truncf %76 : vector<32x256xf32> to vector<32x256xbf16>
    %85 = arith.truncf %83 : vector<32x256xf32> to vector<32x256xbf16>
    %86 = tpu.concatenate %84, %85 in 1 : vector<32x256xbf16>, vector<32x256xbf16> -> vector<32x512xbf16>
    %c0_22 = arith.constant 0 : index
    %c0_23 = arith.constant 0 : index
    %87 = vector.load %arg7[%c0_22, %c0_23] : memref<512x256xbf16, #tpu.memory_space<vmem>>, vector<512x256xbf16>
    %cst_24 = arith.constant dense<0.000000e+00> : vector<32x256xf32>
    %88 = tpu.matmul %86, %87, %cst_24 {dimension_numbers = #tpu.dot_dimension_numbers<[1], [0], [0], [1], [0, 0, 1, 1], [], []>} : vector<32x512xbf16>, vector<512x256xbf16>, vector<32x256xf32> -> vector<32x256xf32>
    %c0_25 = arith.constant 0 : index
    %c0_26 = arith.constant 0 : index
    %89 = vector.load %arg8[%c0_25, %c0_26] : memref<1x256xf32, #tpu.memory_space<vmem>>, vector<1x256xf32>
    %90 = vector.broadcast %89 : vector<1x256xf32> to vector<32x256xf32>
    %91 = arith.addf %88, %90 : vector<32x256xf32>
    %92 = tpu.iota {dimensions = array<i32: 0>} : vector<8x1xi32>
    %93 = vector.extract_strided_slice %91 {offsets = [14, 0], sizes = [18, 256], strides = [1, 1]} : vector<32x256xf32> to vector<18x256xf32>
    %94 = vector.extract_strided_slice %91 {offsets = [0, 0], sizes = [14, 256], strides = [1, 1]} : vector<32x256xf32> to vector<14x256xf32>
    %95 = tpu.concatenate %93, %94 in 0 : vector<18x256xf32>, vector<14x256xf32> -> vector<32x256xf32>
    %96 = vector.extract_strided_slice %95 {offsets = [0, 0], sizes = [8, 256], strides = [1, 1]} : vector<32x256xf32> to vector<8x256xf32>
    %c1_i32 = arith.constant 1 : i32
    %97 = vector.broadcast %c1_i32 : i32 to vector<8x1xi32>
    %98 = arith.cmpi eq, %92, %97 : vector<8x1xi32>
    %99 = vector.extract_strided_slice %91 {offsets = [29, 0], sizes = [3, 256], strides = [1, 1]} : vector<32x256xf32> to vector<3x256xf32>
    %100 = vector.extract_strided_slice %91 {offsets = [0, 0], sizes = [29, 256], strides = [1, 1]} : vector<32x256xf32> to vector<29x256xf32>
    %101 = tpu.concatenate %99, %100 in 0 : vector<3x256xf32>, vector<29x256xf32> -> vector<32x256xf32>
    %102 = vector.extract_strided_slice %101 {offsets = [0, 0], sizes = [8, 256], strides = [1, 1]} : vector<32x256xf32> to vector<8x256xf32>
    %103 = vector.shape_cast %98 : vector<8x1xi1> to vector<8x1xi1>
    %104 = vector.broadcast %103 : vector<8x1xi1> to vector<8x256xi1>
    %105 = arith.select %104, %102, %96 : vector<8x256xi1>, vector<8x256xf32>
    %106 = arith.truncf %105 : vector<8x256xf32> to vector<8x256xbf16>
    %c0_27 = arith.constant 0 : index
    %c0_28 = arith.constant 0 : index
    %107 = vector.load %arg9[%c0_27, %c0_28] : memref<256x128xbf16, #tpu.memory_space<vmem>>, vector<256x128xbf16>
    %cst_29 = arith.constant dense<0.000000e+00> : vector<8x128xf32>
    %108 = tpu.matmul %106, %107, %cst_29 {dimension_numbers = #tpu.dot_dimension_numbers<[1], [0], [0], [1], [0, 0, 1, 1], [], []>} : vector<8x256xbf16>, vector<256x128xbf16>, vector<8x128xf32> -> vector<8x128xf32>
    %c0_30 = arith.constant 0 : index
    %c0_31 = arith.constant 0 : index
    %109 = vector.load %arg10[%c0_30, %c0_31] : memref<1x128xf32, #tpu.memory_space<vmem>>, vector<1x128xf32>
    %110 = vector.broadcast %109 : vector<1x128xf32> to vector<8x128xf32>
    %111 = arith.addf %108, %110 : vector<8x128xf32>
    %cst_32 = arith.constant dense<0xFF800000> : vector<8xf32>
    %112 = vector.multi_reduction <maximumf>, %111, %cst_32 [1] : vector<8x128xf32> to vector<8xf32>
    %113 = vector.shape_cast %112 : vector<8xf32> to vector<8x1xf32>
    %114 = vector.broadcast %113 : vector<8x1xf32> to vector<8x128xf32>
    %115 = arith.subf %111, %114 : vector<8x128xf32>
    %116 = math.exp %115 : vector<8x128xf32>
    %cst_33 = arith.constant dense<0.000000e+00> : vector<8xf32>
    %117 = vector.multi_reduction <add>, %116, %cst_33 [1] : vector<8x128xf32> to vector<8xf32>
    %118 = vector.shape_cast %117 : vector<8xf32> to vector<8x1xf32>
    %119 = vector.broadcast %118 : vector<8x1xf32> to vector<8x128xf32>
    %120 = arith.divf %116, %119 : vector<8x128xf32>
    %c0_34 = arith.constant 0 : index
    %c0_35 = arith.constant 0 : index
    %121 = vector.load %arg11[%c0_34, %c0_35] : memref<8x128xf32, #tpu.memory_space<vmem>>, vector<8x128xf32>
    tpu.vector_store %arg11[%c0_34, %c0_35], %120 {strides = array<i32>} : memref<8x128xf32, #tpu.memory_space<vmem>>, vector<8x128xf32>,
    return
  }
}

</mosaic_0001>

<bundles_post_ra>
// kernel: fpl_predictor.1
= control target key start
LH: loop header
LB: loop body
LE: loop exit
PB: predicated region body
PF: predicated region fallthrough
CT: control target
= control target key end

     0   :  { %16 = vsyncpa [#allocation3], 0  ;;  %s4379_s0 = inlined_call_operand.vmem [shape: f32[32,4], index: 0, kind: input, shape index: {}]   ;;  %s4380_s1 = inlined_call_operand.vmem [shape: bf16[8,256], index: 1, kind: input, shape index: {}]   ;;  %s4381_s2 = inlined_call_operand.vmem [shape: f32[1,256], index: 2, kind: input, shape index: {}]   ;;  %s4382_s3 = inlined_call_operand.hbm [shape: bf16[512,256], index: 3, kind: input, shape index: {}]   ;;  %s4383_s4 = inlined_call_operand.vmem [shape: f32[1,256], index: 4, kind: input, shape index: {}]   ;;  %s4384_s5 = inlined_call_operand.hbm [shape: bf16[512,256], index: 5, kind: input, shape index: {}]   ;;  %s4385_s6 = inlined_call_operand.vmem [shape: f32[1,256], index: 6, kind: input, shape index: {}]   ;;  %s4386_s7 = inlined_call_operand.hbm [shape: bf16[512,256], index: 7, kind: input, shape index: {}]   ;;  %s4387_s8 = inlined_call_operand.vmem [shape: f32[1,256], index: 8, kind: input, shape index: {}]   ;;  %s4388_s9 = inlined_call_operand.hbm [shape: bf16[256,128], index: 9, kind: input, shape index: {}]   ;;  %s4389_s10 = inlined_call_operand.vmem [shape: f32[1,128], index: 10, kind: input, shape index: {}]   ;;  %s4390_s11 = inlined_call_operand.vmem [shape: f32[8,128], index: 11, kind: output, shape index: {}]  }
   0x1   :  { %17 = vsyncpa [#allocation5], 0 }
   0x2   :  { %18 = vsyncpa [#allocation8], 0  ;;  %s44_s19 = sshll.u32 %s4384_s5, 4  ;;  %s3711_s20 = smov [#allocation4]   ;;  %s45_s19 = int_to_ptr.hbm [resolvable:$true] %s44_s19 }
   0x3   :  { %s46_s21 = sshll.u32 %s3711_s20, 4  ;;  %s29_s24 = sshll.u32 %s4382_s3, 4  ;;  %s47_s21 = int_to_ptr.vmem [resolvable:$true] %s46_s21  ;;  %s30_s24 = int_to_ptr.hbm [resolvable:$true] %s29_s24 }
   0x4   :  { %s3712_s25 = smov 128   ;;  %s3713_s26 = smov 8  }
   0x5   :  { %52 = dma.hbm_to_vmem [thread:$0]  %s45_s19, 8192, %s47_s21, [#allocation5], %s3712_s25, %s3712_s25, %s3713_s26  }
   0x6   :  { %s3714_s27 = smov [#allocation2]   ;;  %s59_s12 = sshll.u32 %s4386_s7, 4  ;;  %s60_s12 = int_to_ptr.hbm [resolvable:$true] %s59_s12 }
   0x7   :  { %s31_s28 = sshll.u32 %s3714_s27, 4  ;;  %s74_s14 = sshll.u32 %s4388_s9, 4  ;;  %s32_s28 = int_to_ptr.vmem [resolvable:$true] %s31_s28  ;;  %s75_s14 = int_to_ptr.hbm [resolvable:$true] %s74_s14 }
   0x8   :  { %37 = dma.hbm_to_vmem [thread:$0]  %s30_s24, 8192, %s32_s28, [#allocation3], %s3712_s25, %s3712_s25, %s3713_s26  }
   0x9   :  { %s3715_s15 = smov [#allocation6]   ;;  %s3716_s3 = smov [#allocation7]  }
   0xa   :  { %s61_s16 = sshll.u32 %s3715_s15, 4  ;;  %s76_s17 = sshll.u32 %s3716_s3, 4  ;;  %s62_s16 = int_to_ptr.vmem [resolvable:$true] %s61_s16  ;;  %s77_s17 = int_to_ptr.vmem [resolvable:$true] %s76_s17 }
   0xb   :  { %67 = dma.hbm_to_vmem [thread:$0]  %s60_s12, 8192, %s62_s16, [#allocation5], %s3712_s25, %s3712_s25, %s3713_s26  }
   0xc   :  { %s3717_s18 = smov 64   ;;  %s3718_s19 = smov 4  }
   0xd   :  { %82 = dma.hbm_to_vmem [thread:$0]  %s75_s14, 2048, %s77_s17, [#allocation8], %s3717_s18, %s3717_s18, %s3718_s19  }
   0xe   :  { %3705 = dma.done.wait [#allocation3], 8192  }
   0xf   :  { %3706 = vsyncadd [#allocation3], 4294959104 }
  0x10   :  { %3707 = dma.done.wait [#allocation5], 16384  }
  0x11   :  { %3708 = vsyncadd [#allocation5], 4294950912 }
  0x12   :  { %3709 = dma.done.wait [#allocation8], 2048  }
  0x13   :  { %3710 = vsyncadd [#allocation8], 4294965248  ;;  %v102_v0 = vlaneseq  ;;  %v131_v6 = vld [vmem:[%s4379_s0] sm:$0xff]  ;;  %v132_v7 = vld [vmem:[%s4379_s0 + $0x8] sm:$0xff]  ;;  %vm139_vm0 = vcmask 1046528   ;;  %vm221_vm3 = vcmask 1043456  }
  0x14   :  { %v133_v8 = vld [vmem:[%s4379_s0 + $0x10] sm:$0xff]  ;;  %v140_v9 = vrot.slane %v131_v6, 1  ;;  %v141_v10 = vrot.slane %v132_v7, 1  ;;  %v134_v12 = vld [vmem:[%s4379_s0 + $0x18] sm:$0xff]  ;;  %v204_v13 = vld [vmem:[%s4380_s1] sm:$0xff]  ;;  %v165_v37 = vpack.c.bf16 %v131_v6, %v131_v6  ;;  %v166_v38 = vpack.c.bf16 %v132_v7, %v132_v7 }
  0x15   :  { %v3792_v1 = vshrl.u32 %v102_v0, 7  ;;  %v143_v11 = vrot.slane %v133_v8, 1  ;;  %v145_v14 = vrot.slane %v134_v12, 1  ;;  %v212_v15 = vunpack.c.l.b16 %v204_v13  ;;  %v2614_v51 = vld [vmem:[#allocation2 + $0x70] sm:$0xf] }
  0x16   :  { %v213_v16 = vunpack.c.h.b16 %v204_v13  ;;  %v142_v17 = vsel %vm139_vm0, %v140_v9, %v141_v10  ;;  %v177_v39 = vunpack.c.l.b16 %v165_v37  ;;  %v178_v40 = vunpack.c.l.b16 %v166_v38  ;;  %v3403_v52 = vld [vmem:[#allocation2 + $0x74] sm:$0xf0]  ;;  %v2678_v53 = vld [vmem:[#allocation2 + $0xf0] sm:$0xf]  ;;  %v2606_v57 = vld [vmem:[#allocation2 + $0x60] sm:$0xf] }
  0x17   :  { %v104_v2 = vadd.s32 8, %v3792_v1  ;;  %v106_v3 = vadd.s32 24, %v3792_v1  ;;  %v144_v18 = vsel %vm139_vm0, %v141_v10, %v143_v11  ;;  %v169_v20 = vpack.c.bf16 %v142_v17, %v142_v17  ;;  %v3419_v55 = vld [vmem:[#allocation2 + $0xf4] sm:$0xf0]  ;;  %v3401_v58 = vld [vmem:[#allocation2 + $0x64] sm:$0xf0] }
  0x18   :  { %v146_v21 = vsel %vm139_vm0, %v143_v11, %v145_v14  ;;  %v152_v22 = vsel %vm139_vm0, %v145_v14, %v140_v9  ;;  %v214_v25 = vpack.c.b16 %v212_v15, %v212_v15  ;;  %v215_v27 = vpack.c.b16 %v213_v16, %v213_v16  ;;  %v2670_v59 = vld [vmem:[#allocation2 + $0xe0] sm:$0xf]  ;;  %v3417_v61 = vld [vmem:[#allocation2 + $0xe4] sm:$0xf0]  ;;  %v2598_v63 = vld [vmem:[#allocation2 + $0x50] sm:$0xf] }
  0x19   :  { %v3796_v4 = vand.u32 15, %v104_v2  ;;  %v3798_v5 = vand.u32 15, %v106_v3  ;;  %v187_v26 = vunpack.c.l.b16 %v169_v20  ;;  %v171_v29 = vpack.c.bf16 %v146_v21, %v146_v21  ;;  %v3399_v0 = vld [vmem:[#allocation2 + $0x54] sm:$0xf0]  ;;  %v2662_v2 = vld [vmem:[#allocation2 + $0xd0] sm:$0xf] }
  0x1a   :  { %v223_v31 = vsel %vm221_vm3, %v214_v25, 0  ;;  %v226_v32 = vsel %vm221_vm3, %v215_v27, 0  ;;  %v181_v41 = vpack.c.b16 %v178_v40, %v177_v39  ;;  %vm197_vm4 = vcmask 31744   ;;  %v3415_v6 = vld [vmem:[#allocation2 + $0xd4] sm:$0xf0] }
  0x1b   :  { %vm112_vm1 = vcmp.eq.s32.totalorder %v3796_v4, 15  ;;  %vm114_vm2 = vcmp.eq.s32.totalorder %v3798_v5, 15  ;;  %235 = vmatpush.bf16.msra.mxu0 %v223_v31  ;;  %254 = vmatpush.bf16.msra.mxu1 %v226_v32  ;;  %v189_v34 = vunpack.c.l.b16 %v171_v29  ;;  %vm216_vm5 = vcmask 64512   ;;  %v3435_v9 = vld [vmem:[#allocation2 + $0x174] sm:$0xf0] }
  0x1c   :  { %v162_v19 = vsel %vm112_vm1, 0.0, %v144_v18  ;;  %v164_v24 = vsel %vm114_vm2, 0.0, %v152_v22  ;;  %v167_v44 = vpack.c.bf16 %v133_v8, %v133_v8  ;;  %v168_v45 = vpack.c.bf16 %v134_v12, %v134_v12  ;;  %v2742_v8 = vld [vmem:[#allocation2 + $0x170] sm:$0xf]  ;;  %v2590_v10 = vld [vmem:[#allocation2 + $0x40] sm:$0xf] }
  0x1d   :  { %v170_v23 = vpack.c.bf16 %v162_v19, %v162_v19  ;;  %v172_v30 = vpack.c.bf16 %v164_v24, %v164_v24  ;;  %v2615_v54 = vor.u32 %v3403_v52, %v2614_v51  ;;  %v2679_v56 = vor.u32 %v3419_v55, %v2678_v53  ;;  %v3397_v12 = vld [vmem:[#allocation2 + $0x44] sm:$0xf0]  ;;  %v2654_v13 = vld [vmem:[#allocation2 + $0xc0] sm:$0xf]  ;;  %v2806_v17 = vld [vmem:[#allocation2 + $0x1f0] sm:$0xf] }
  0x1e   :  { %v179_v46 = vunpack.c.l.b16 %v167_v44  ;;  %v180_v47 = vunpack.c.l.b16 %v168_v45  ;;  %v2607_v60 = vor.u32 %v3401_v58, %v2606_v57  ;;  %v2671_v62 = vor.u32 %v3417_v61, %v2670_v59  ;;  %v3413_v14 = vld [vmem:[#allocation2 + $0xc4] sm:$0xf0]  ;;  %v3451_v18 = vld [vmem:[#allocation2 + $0x1f4] sm:$0xf0]  ;;  %v2734_v20 = vld [vmem:[#allocation2 + $0x160] sm:$0xf] }
  0x1f   :  { %v188_v28 = vunpack.c.l.b16 %v170_v23  ;;  %v190_v35 = vunpack.c.l.b16 %v172_v30  ;;  %805 = vmatpush.bf16.msra.mxu2 %v2615_v54  ;;  %824 = vmatpush.bf16.msra.mxu3 %v2679_v56  ;;  %v2599_v3 = vor.u32 %v3399_v0, %v2598_v63  ;;  %v2663_v7 = vor.u32 %v3415_v6, %v2662_v2  ;;  %v3433_v21 = vld [vmem:[#allocation2 + $0x164] sm:$0xf0]  ;;  %v2582_v22 = vld [vmem:[#allocation2 + $0x30] sm:$0xf]  ;;  %v3395_v24 = vld [vmem:[#allocation2 + $0x34] sm:$0xf0] }
  0x20   :  { %v182_v48 = vpack.c.b16 %v180_v47, %v179_v46  ;;  %v2743_v11 = vor.u32 %v3435_v9, %v2742_v8  ;;  %v2591_v15 = vor.u32 %v3397_v12, %v2590_v10  ;;  %v2655_v16 = vor.u32 %v3413_v14, %v2654_v13  ;;  %v2646_v25 = vld [vmem:[#allocation2 + $0xb0] sm:$0xf]  ;;  %v2798_v29 = vld [vmem:[#allocation2 + $0x1e0] sm:$0xf]  ;;  %v3449_v30 = vld [vmem:[#allocation2 + $0x1e4] sm:$0xf0] }
  0x21   :  { %v191_v33 = vpack.c.b16 %v188_v28, %v187_v26  ;;  %v192_v36 = vpack.c.b16 %v190_v35, %v189_v34  ;;  %v2807_v19 = vor.u32 %v3451_v18, %v2806_v17  ;;  %v2735_v23 = vor.u32 %v3433_v21, %v2734_v20  ;;  %v3411_v26 = vld [vmem:[#allocation2 + $0xb4] sm:$0xf0]  ;;  %v2726_v32 = vld [vmem:[#allocation2 + $0x150] sm:$0xf]  ;;  %v2574_v34 = vld [vmem:[#allocation2 + $0x20] sm:$0xf] }
  0x22   :  { %843 = vmatpush.bf16.msrb.mxu0 %v2743_v11  ;;  %v2583_v27 = vor.u32 %v3395_v24, %v2582_v22  ;;  %v2647_v28 = vor.u32 %v3411_v26, %v2646_v25  ;;  %v2799_v31 = vor.u32 %v3449_v30, %v2798_v29  ;;  %v2638_v37 = vld [vmem:[#allocation2 + $0xa0] sm:$0xf]  ;;  %v3409_v38 = vld [vmem:[#allocation2 + $0xa4] sm:$0xf0]  ;;  %v2566_v46 = vld [vmem:[#allocation2 + $0x10] sm:$0xf] }
  0x23   :  { %193 = vrot.lane.b32.xlu0 %v191_v33, %s3718_s19  ;;  %806 = vmatpush.bf16.msra.mxu2 %v2607_v60  ;;  %v3431_v33 = vld [vmem:[#allocation2 + $0x154] sm:$0xf0]  ;;  %v2639_v40 = vor.u32 %v3409_v38, %v2638_v37  ;;  %v2718_v44 = vld [vmem:[#allocation2 + $0x140] sm:$0xf]  ;;  %v3429_v45 = vld [vmem:[#allocation2 + $0x144] sm:$0xf0] }
  0x24   :  { %825 = vmatpush.bf16.msra.mxu3 %v2671_v62  ;;  %862 = vmatpush.bf16.msrb.mxu1 %v2807_v19  ;;  %v2727_v35 = vor.u32 %v3431_v33, %v2726_v32  ;;  %v2719_v47 = vor.u32 %v3429_v45, %v2718_v44  ;;  %v2782_v53 = vld [vmem:[#allocation2 + $0x1c0] sm:$0xf]  ;;  %v3445_v54 = vld [vmem:[#allocation2 + $0x1c4] sm:$0xf0]  ;;  %v2710_v57 = vld [vmem:[#allocation2 + $0x130] sm:$0xf] }
  0x25   :  { %v205_v55 = vld [vmem:[%s4381_s2] sm:$0x3]  ;;  %v2783_v56 = vor.u32 %v3445_v54, %v2782_v53  ;;  %v3427_v58 = vld [vmem:[#allocation2 + $0x134] sm:$0xf0]  ;;  %v3389_v61 = vld [vmem:[#allocation2 + $0x4] sm:$0xf0] }
  0x26   :  { %844 = vmatpush.bf16.msrb.mxu0 %v2735_v23  ;;  %v2558_v59 = vld [vmem:[#allocation2] sm:$0xf]  ;;  %v2711_v60 = vor.u32 %v3427_v58, %v2710_v57  ;;  %v3405_v63 = vld [vmem:[#allocation2 + $0x84] sm:$0xf0]  ;;  %v3443_v6 = vld [vmem:[#allocation2 + $0x1b4] sm:$0xf0] }
  0x27   :  { %807 = vmatpush.bf16.msra.mxu2 %v2599_v3  ;;  %v2622_v62 = vld [vmem:[#allocation2 + $0x80] sm:$0xf]  ;;  %v2559_v0 = vor.u32 %v3389_v61, %v2558_v59  ;;  %v2774_v3 = vld [vmem:[#allocation2 + $0x1b0] sm:$0xf]  ;;  %v3830_v8 = vperm.slane %v205_v55, 1  ;;  %vm324_vm6 = vcmask 1045504  }
  0x28   :  { %826 = vmatpush.bf16.msra.mxu3 %v2663_v7  ;;  %863 = vmatpush.bf16.msrb.mxu1 %v2799_v31  ;;  %v2623_v2 = vor.u32 %v3405_v63, %v2622_v62  ;;  %v3828_v7 = vperm.slane %v205_v55, 0  ;;  %v2775_v9 = vor.u32 %v3443_v6, %v2774_v3  ;;  %v2702_v10 = vld [vmem:[#allocation2 + $0x120] sm:$0xf]  ;;  %v3425_v11 = vld [vmem:[#allocation2 + $0x124] sm:$0xf0]  ;;  %vm116_vm7 = vcmp.eq.s32.totalorder %v3796_v4, 14 }
  0x29   :  { %v2766_v12 = vld [vmem:[#allocation2 + $0x1a0] sm:$0xf]  ;;  %v3402_v17 = vld [vmem:[#allocation2 + $0x74] sm:$0xf]  ;;  %v2616_v18 = vld [vmem:[#allocation2 + $0x78] sm:$0xf0] }
  0x2a   :  { %845 = vmatpush.bf16.msrb.mxu0 %v2727_v35  ;;  %v2619_v22 = vor.u32 %v3402_v17, %v2616_v18  ;;  %v3418_v23 = vld [vmem:[#allocation2 + $0xf4] sm:$0xf]  ;;  %v2680_v24 = vld [vmem:[#allocation2 + $0xf8] sm:$0xf0]  ;;  %v2694_v26 = vld [vmem:[#allocation2 + $0x110] sm:$0xf] }
  0x2b   :  { %195 = vrot.lane.b32.xlu0 %v192_v36, %s3718_s19  ;;  %808 = vmatpush.bf16.msra.mxu2 %v2591_v15  ;;  %v3393_v36 = vld [vmem:[#allocation2 + $0x24] sm:$0xf0]  ;;  %v2703_v15 = vor.u32 %v3425_v11, %v2702_v10  ;;  %v2683_v25 = vor.u32 %v3418_v23, %v2680_v24  ;;  %v3439_v30 = vld [vmem:[#allocation2 + $0x194] sm:$0xf0]  ;;  %v3400_v31 = vld [vmem:[#allocation2 + $0x64] sm:$0xf] }
  0x2c   :  { %827 = vmatpush.bf16.msra.mxu3 %v2655_v16  ;;  %v2575_v39 = vor.u32 %v3393_v36, %v2574_v34  ;;  %v3441_v16 = vld [vmem:[#allocation2 + $0x1a4] sm:$0xf0]  ;;  %v2608_v33 = vld [vmem:[#allocation2 + $0x68] sm:$0xf0]  ;;  %v3416_v34 = vld [vmem:[#allocation2 + $0xe4] sm:$0xf] }
  0x2d   :  { %v2767_v21 = vor.u32 %v3441_v16, %v2766_v12  ;;  %v2672_v35 = vld [vmem:[#allocation2 + $0xe8] sm:$0xf0]  ;;  %v2611_v38 = vor.u32 %v3400_v31, %v2608_v33  ;;  %v3437_v44 = vld [vmem:[#allocation2 + $0x184] sm:$0xf0]  ;;  %v3398_v45 = vld [vmem:[#allocation2 + $0x54] sm:$0xf] }
  0x2e   :  { %846 = vmatpush.bf16.msrb.mxu0 %v2719_v47  ;;  %v2600_v47 = vld [vmem:[#allocation2 + $0x58] sm:$0xf0]  ;;  %v3396_v62 = vld [vmem:[#allocation2 + $0x44] sm:$0xf]  ;;  %v2592_v3 = vld [vmem:[#allocation2 + $0x48] sm:$0xf0] }
  0x2f   :  { %809 = vmatpush.bf16.msra.mxu2 %v2583_v27  ;;  %v3423_v27 = vld [vmem:[#allocation2 + $0x114] sm:$0xf0]  ;;  %v2744_v61 = vld [vmem:[#allocation2 + $0x178] sm:$0xf0]  ;;  %v3412_v6 = vld [vmem:[#allocation2 + $0xc4] sm:$0xf] }
  0x30   :  { %828 = vmatpush.bf16.msra.mxu3 %v2647_v28  ;;  %v2758_v28 = vld [vmem:[#allocation2 + $0x190] sm:$0xf]  ;;  %v2695_v29 = vor.u32 %v3423_v27, %v2694_v26  ;;  %v2656_v10 = vld [vmem:[#allocation2 + $0xc8] sm:$0xf0]  ;;  %v3450_v11 = vld [vmem:[#allocation2 + $0x1f4] sm:$0xf] }
  0x31   :  { %v2759_v32 = vor.u32 %v3439_v30, %v2758_v28  ;;  %v2808_v12 = vld [vmem:[#allocation2 + $0x1f8] sm:$0xf0]  ;;  %v3394_v23 = vld [vmem:[#allocation2 + $0x34] sm:$0xf]  ;;  %v3448_v31 = vld [vmem:[#allocation2 + $0x1e4] sm:$0xf] }
  0x32   :  { %847 = vmatpush.bf16.msrb.mxu0 %v2711_v60  ;;  %v3434_v60 = vld [vmem:[#allocation2 + $0x174] sm:$0xf]  ;;  %v2584_v27 = vld [vmem:[#allocation2 + $0x38] sm:$0xf0]  ;;  %vm118_vm8 = vcmp.eq.s32.totalorder %v3798_v5, 14  ;;  %vm120_vm9 = vcmp.eq.s32.totalorder %v3796_v4, 12 }
  0x33   :  { %810 = vmatpush.bf16.msra.mxu2 %v2575_v39  ;;  %v2675_v39 = vor.u32 %v3416_v34, %v2672_v35  ;;  %v3410_v28 = vld [vmem:[#allocation2 + $0xb4] sm:$0xf]  ;;  %v2587_v30 = vor.u32 %v3394_v23, %v2584_v27  ;;  %vm122_vm10 = vcmp.eq.s32.totalorder %v3798_v5, 12  ;;  %vm1659_vm11 = vcmask 1041408  }
  0x34   :  { %829 = vmatpush.bf16.msra.mxu3 %v2639_v40  ;;  %v2686_v40 = vld [vmem:[#allocation2 + $0x100] sm:$0xf]  ;;  %vm2342_vm1 = vcmp.eq.s32.totalorder %v3792_v1, 1 }
  0x36   :  { %848 = vmatpush.bf16.msrb.mxu0 %v2703_v15 }
  0x3a   :  { %849 = vmatpush.bf16.msrb.mxu0 %v2695_v29  ;;  %v2648_v29 = vld [vmem:[#allocation2 + $0xb8] sm:$0xf0] }
  0x3b   :  { %v2651_v35 = vor.u32 %v3410_v28, %v2648_v29  ;;  %v3426_v28 = vld [vmem:[#allocation2 + $0x134] sm:$0xf]  ;;  %v2712_v29 = vld [vmem:[#allocation2 + $0x138] sm:$0xf0] }
  0x95   :  { %v194_v42 = vpop.permute.xlu0 %193 }
  0x96   :  { %v200_v43 = vsel %vm197_vm4, %v181_v41, %v194_v42  ;;  %v2790_v41 = vld [vmem:[#allocation2 + $0x1d0] sm:$0xf]  ;;  %v3447_v42 = vld [vmem:[#allocation2 + $0x1d4] sm:$0xf0] }
  0x97   :  { %2552 = vmatmul.msk.bf16.vlgmr.msra.gmra.mxu0 %vm216_vm5, %v200_v43  ;;  %2554 = vmatmul.msk.bf16.vlgmr.msra.gmra.mxu1 %vm216_vm5, %v200_v43  ;;  %v2791_v43 = vor.u32 %v3447_v42, %v2790_v41  ;;  %v3421_v41 = vld [vmem:[#allocation2 + $0x104] sm:$0xf0] }
  0x98   :  { %v2687_v42 = vor.u32 %v3421_v41, %v2686_v40  ;;  %v2728_v40 = vld [vmem:[#allocation2 + $0x158] sm:$0xf0] }
  0x99   :  { %864 = vmatpush.bf16.msrb.mxu1 %v2791_v43  ;;  %v2750_v43 = vld [vmem:[#allocation2 + $0x180] sm:$0xf] }
  0x9a   :  { %850 = vmatpush.bf16.msrb.mxu0 %v2687_v42 }
  0x9d   :  { %v196_v49 = vpop.permute.xlu0 %195  ;;  %865 = vmatpush.bf16.msrb.mxu1 %v2783_v56 }
  0x9e   :  { %v203_v50 = vsel %vm197_vm4, %v182_v48, %v196_v49  ;;  %v3391_v48 = vld [vmem:[#allocation2 + $0x14] sm:$0xf0]  ;;  %v2630_v49 = vld [vmem:[#allocation2 + $0x90] sm:$0xf] }
  0x9f   :  { %v2567_v51 = vor.u32 %v3391_v48, %v2566_v46  ;;  %v2751_v46 = vor.u32 %v3437_v44, %v2750_v43  ;;  %v3414_v48 = vld [vmem:[#allocation2 + $0xd4] sm:$0xf]  ;;  %v3392_v44 = vld [vmem:[#allocation2 + $0x24] sm:$0xf] }
  0xa1   :  { %811 = vmatpush.bf16.msra.mxu2 %v2567_v51  ;;  %866 = vmatpush.bf16.msrb.mxu1 %v2775_v9  ;;  %v2595_v9 = vor.u32 %v3396_v62, %v2592_v3  ;;  %v3390_v62 = vld [vmem:[#allocation2 + $0x14] sm:$0xf] }
  0xa2   :  { %v3406_v3 = vld [vmem:[#allocation2 + $0x94] sm:$0xf] }
  0xa5   :  { %812 = vmatpush.bf16.msra.mxu2 %v2559_v0  ;;  %867 = vmatpush.bf16.msrb.mxu1 %v2767_v21  ;;  %v3432_v21 = vld [vmem:[#allocation2 + $0x164] sm:$0xf] }
  0xa7   :  { %2553 = vmatmul.msk.bf16.gmra.mxu0 %vm216_vm5, %v203_v50  ;;  %2555 = vmatmul.msk.bf16.gmra.mxu1 %vm216_vm5, %v203_v50  ;;  %v3407_v50 = vld [vmem:[#allocation2 + $0x94] sm:$0xf0] }
  0xa8   :  { %v2631_v52 = vor.u32 %v3407_v50, %v2630_v49  ;;  %v2664_v49 = vld [vmem:[#allocation2 + $0xd8] sm:$0xf0] }
  0xa9   :  { %881 = vmatpush.bf16.msrb.mxu2 %v2619_v22  ;;  %868 = vmatpush.bf16.msrb.mxu1 %v2759_v32  ;;  %v2667_v53 = vor.u32 %v3414_v48, %v2664_v49  ;;  %v2736_v22 = vld [vmem:[#allocation2 + $0x168] sm:$0xf0]  ;;  %v2792_v49 = vld [vmem:[#allocation2 + $0x1d8] sm:$0xf0] }
  0xaa   :  { %830 = vmatpush.bf16.msra.mxu3 %v2631_v52  ;;  %v2603_v52 = vor.u32 %v3398_v45, %v2600_v47  ;;  %v2739_v26 = vor.u32 %v3432_v21, %v2736_v22  ;;  %v2800_v32 = vld [vmem:[#allocation2 + $0x1e8] sm:$0xf0] }
  0xab   :  { %v2576_v45 = vld [vmem:[#allocation2 + $0x28] sm:$0xf0] }
  0xad   :  { %882 = vmatpush.bf16.msrb.mxu2 %v2611_v38  ;;  %869 = vmatpush.bf16.msrb.mxu1 %v2751_v46  ;;  %v2803_v38 = vor.u32 %v3448_v31, %v2800_v32  ;;  %v3408_v46 = vld [vmem:[#allocation2 + $0xa4] sm:$0xf] }
  0xae   :  { %831 = vmatpush.bf16.msra.mxu3 %v2623_v2  ;;  %v2747_v2 = vor.u32 %v3434_v60, %v2744_v61 }
  0xb0   :  { %919 = vmatpush.bf16.msra.mxu0 %v2747_v2  ;;  %v2568_v2 = vld [vmem:[#allocation2 + $0x18] sm:$0xf0] }
  0xb1   :  { %883 = vmatpush.bf16.msrb.mxu2 %v2603_v52 }
  0xb2   :  { %900 = vmatpush.bf16.msrb.mxu3 %v2683_v25 }
  0xb4   :  { %920 = vmatpush.bf16.msra.mxu0 %v2739_v26 }
  0xb5   :  { %884 = vmatpush.bf16.msrb.mxu2 %v2595_v9 }
  0xb6   :  { %901 = vmatpush.bf16.msrb.mxu3 %v2675_v39  ;;  %v3430_v39 = vld [vmem:[#allocation2 + $0x154] sm:$0xf] }
  0xb7   :  { %v2731_v43 = vor.u32 %v3430_v39, %v2728_v40  ;;  %v3404_v39 = vld [vmem:[#allocation2 + $0x84] sm:$0xf] }
  0xb9   :  { %885 = vmatpush.bf16.msrb.mxu2 %v2587_v30  ;;  %921 = vmatpush.bf16.msra.mxu0 %v2731_v43  ;;  %v3388_v30 = vld [vmem:[#allocation2 + $0x4] sm:$0xf] }
  0xba   :  { %902 = vmatpush.bf16.msrb.mxu3 %v2667_v53 }
 0x114   :  { %v237_v13 = vpop.f32.mrf.mxu0  ;;  %v256_v14 = vpop.f32.mrf.mxu1 }
 0x115   :  { %v3833_v19 = vadd.f32 %v237_v13, %v3828_v7  ;;  %v3836_v20 = vadd.f32 %v256_v14, %v3830_v8  ;;  %v2659_v13 = vor.u32 %v3412_v6, %v2656_v10  ;;  %v2811_v14 = vor.u32 %v3450_v11, %v2808_v12  ;;  %v2632_v12 = vld [vmem:[#allocation2 + $0x98] sm:$0xf0] }
 0x117   :  { %v266_v36 = vmax.f32 %v3833_v19, 0.0  ;;  %v267_v37 = vmax.f32 %v3836_v20, 0.0  ;;  %903 = vmatpush.bf16.msrb.mxu3 %v2659_v13  ;;  %938 = vmatpush.bf16.msra.mxu1 %v2811_v14  ;;  %v2579_v19 = vor.u32 %v3392_v44, %v2576_v45  ;;  %v3446_v20 = vld [vmem:[#allocation2 + $0x1d4] sm:$0xf]  ;;  %v3444_v13 = vld [vmem:[#allocation2 + $0x1c4] sm:$0xf] }
 0x118   :  { %v2795_v60 = vor.u32 %v3446_v20, %v2792_v49  ;;  %v2784_v14 = vld [vmem:[#allocation2 + $0x1c8] sm:$0xf0] }
 0x119   :  { %v3848_v56 = vrot.slane %v266_v36, 1  ;;  %v3852_v57 = vrot.slane %v267_v37, 1  ;;  %886 = vmatpush.bf16.msrb.mxu2 %v2579_v19  ;;  %v2624_v45 = vld [vmem:[#allocation2 + $0x88] sm:$0xf0]  ;;  %v2776_v19 = vld [vmem:[#allocation2 + $0x1b8] sm:$0xf0] }
 0x11b   :  { %904 = vmatpush.bf16.msrb.mxu3 %v2651_v35  ;;  %939 = vmatpush.bf16.msra.mxu1 %v2803_v38  ;;  %v2715_v35 = vor.u32 %v3426_v28, %v2712_v29  ;;  %v2560_v38 = vld [vmem:[#allocation2 + $0x8] sm:$0xf0]  ;;  %v3420_v28 = vld [vmem:[#allocation2 + $0x104] sm:$0xf] }
 0x11c   :  { %v239_v50 = vpop.f32.mrf.mxu0  ;;  %v258_v51 = vpop.f32.mrf.mxu1  ;;  %v2563_v44 = vor.u32 %v3388_v30, %v2560_v38  ;;  %v2688_v29 = vld [vmem:[#allocation2 + $0x108] sm:$0xf0] }
 0x11d   :  { %v3841_v54 = vadd.f32 %v239_v50, %v3828_v7  ;;  %v3844_v55 = vadd.f32 %v258_v51, %v3830_v8  ;;  %v3428_v50 = vld [vmem:[#allocation2 + $0x144] sm:$0xf]  ;;  %v2720_v51 = vld [vmem:[#allocation2 + $0x148] sm:$0xf0] }
 0x11e   :  { %v2723_v61 = vor.u32 %v3428_v50, %v2720_v51 }
 0x11f   :  { %v268_v58 = vmax.f32 %v3841_v54, 0.0  ;;  %v269_v59 = vmax.f32 %v3844_v55, 0.0  ;;  %940 = vmatpush.bf16.msra.mxu1 %v2795_v60  ;;  %v2635_v54 = vor.u32 %v3406_v3, %v2632_v12 }
 0x120   :  { %922 = vmatpush.bf16.msra.mxu0 %v2723_v61 }
 0x121   :  { %v283_v63 = vrot.slane %v268_v58, 1  ;;  %v286_v0 = vrot.slane %v269_v59, 1 }
 0x123   :  { %v284_v17 = vsel %vm139_vm0, %v3848_v56, %v283_v63  ;;  %v287_v18 = vsel %vm139_vm0, %v3852_v57, %v286_v0 }
 0x124   :  { %v242_v15 = vpop.f32.mrf.mxu0  ;;  %v261_v16 = vpop.f32.mrf.mxu1  ;;  %v3874_v41 = vmax.f32 %v266_v36, %v284_v17  ;;  %v3878_v42 = vmax.f32 %v267_v37, %v287_v18  ;;  %v2640_v36 = vld [vmem:[#allocation2 + $0xa8] sm:$0xf0]  ;;  %v2787_v17 = vor.u32 %v3444_v13, %v2784_v14  ;;  %923 = vmatpush.bf16.msra.mxu0 %v2715_v35  ;;  %v3422_v14 = vld [vmem:[#allocation2 + $0x114] sm:$0xf] }
 0x125   :  { %v3865_v24 = vadd.f32 %v242_v15, %v3828_v7  ;;  %v3868_v25 = vadd.f32 %v261_v16, %v3830_v8  ;;  %v2643_v37 = vor.u32 %v3408_v46, %v2640_v36  ;;  %v3442_v46 = vld [vmem:[#allocation2 + $0x1b4] sm:$0xf] }
 0x126   :  { %v325_v55 = vrot.slane %v3874_v41, 2  ;;  %941 = vmatpush.bf16.msra.mxu1 %v2787_v17 }
 0x127   :  { %v270_v33 = vmax.f32 %v3865_v24, 0.0  ;;  %v271_v34 = vmax.f32 %v3868_v25, 0.0  ;;  %905 = vmatpush.bf16.msrb.mxu3 %v2643_v37  ;;  %v2779_v24 = vor.u32 %v3442_v46, %v2776_v19  ;;  %v3424_v25 = vld [vmem:[#allocation2 + $0x124] sm:$0xf] }
 0x129   :  { %v3882_v47 = vrot.slane %v270_v33, 1  ;;  %v3886_v48 = vrot.slane %v271_v34, 1 }
 0x12a   :  { %942 = vmatpush.bf16.msra.mxu1 %v2779_v24 }
 0x12b   :  { %v289_v52 = vsel %vm139_vm0, %v283_v63, %v3882_v47  ;;  %v291_v53 = vsel %vm139_vm0, %v286_v0, %v3886_v48  ;;  %v367_v63 = vpack.c.bf16 %v3878_v42, %v3874_v41  ;;  %v2571_v0 = vor.u32 %v3390_v62, %v2568_v2  ;;  %906 = vmatpush.bf16.msrb.mxu3 %v2635_v54 }
 0x12c   :  { %v244_v6 = vpop.f32.mrf.mxu0  ;;  %v263_v9 = vpop.f32.mrf.mxu1  ;;  %v3894_v10 = vmax.f32 %v268_v58, %v289_v52  ;;  %v3898_v11 = vmax.f32 %v269_v59, %v291_v53  ;;  %v328_v58 = vrot.slane %v3878_v42, 2 }
 0x12d   :  { %v245_v15 = vadd.f32 %v244_v6, %v3828_v7  ;;  %v264_v16 = vadd.f32 %v263_v9, %v3830_v8  ;;  %v379_v8 = vunpack.c.l.b16 %v367_v63  ;;  %v380_v26 = vunpack.c.h.b16 %v367_v63  ;;  %887 = vmatpush.bf16.msrb.mxu2 %v2571_v0  ;;  %v3440_v63 = vld [vmem:[#allocation2 + $0x1a4] sm:$0xf]  ;;  %v2768_v0 = vld [vmem:[#allocation2 + $0x1a8] sm:$0xf0] }
 0x12e   :  { %v368_v59 = vpack.c.bf16 %v3898_v11, %v3894_v10  ;;  %v326_v22 = vrot.slane %v3894_v10, 2  ;;  %v329_v7 = vrot.slane %v3898_v11, 2 }
 0x12f   :  { %v272_v18 = vmax.f32 %v245_v15, 0.0  ;;  %v273_v21 = vmax.f32 %v264_v16, 0.0  ;;  %v2696_v15 = vld [vmem:[#allocation2 + $0x118] sm:$0xf0] }
 0x130   :  { %v381_v23 = vunpack.c.l.b16 %v368_v59  ;;  %v382_v27 = vunpack.c.h.b16 %v368_v59 }
 0x131   :  { %v292_v31 = vrot.slane %v272_v18, 1  ;;  %v294_v32 = vrot.slane %v273_v21, 1  ;;  %888 = vmatpush.bf16.msrb.mxu2 %v2563_v44  ;;  %v2752_v44 = vld [vmem:[#allocation2 + $0x188] sm:$0xf0] }
 0x132   :  { %v3910_v40 = vpack.c.b16 %v381_v23, %v379_v8  ;;  %v3912_v43 = vpack.c.b16 %v382_v27, %v380_v26  ;;  %v2699_v27 = vor.u32 %v3422_v14, %v2696_v15  ;;  %v2854_v14 = vld [vmem:[#allocation4 + $0x50] sm:$0xf]  ;;  %v3463_v15 = vld [vmem:[#allocation4 + $0x54] sm:$0xf0] }
 0x133   :  { %v293_v36 = vsel %vm139_vm0, %v3882_v47, %v292_v31  ;;  %v306_v20 = vsel %vm139_vm0, %v292_v31, %v3848_v56  ;;  %v295_v37 = vsel %vm139_vm0, %v3886_v48, %v294_v32  ;;  %v307_v49 = vsel %vm139_vm0, %v294_v32, %v3852_v57 }
 0x134   :  { %v3924_v50 = vmax.f32 %v270_v33, %v293_v36  ;;  %v3928_v51 = vmax.f32 %v271_v34, %v295_v37  ;;  %813 = vmatmul.bf16.vlgmr.msra.gmra.mxu2 %v3910_v40  ;;  %v327_v56 = vsel %vm324_vm6, %v325_v55, %v326_v22  ;;  %v330_v47 = vsel %vm324_vm6, %v328_v58, %v329_v7  ;;  %v2704_v33 = vld [vmem:[#allocation2 + $0x128] sm:$0xf0] }
 0x135   :  { %832 = vmatmul.bf16.vlgmr.msra.gmra.mxu3 %v3912_v43  ;;  %v2627_v57 = vor.u32 %v3404_v39, %v2624_v45  ;;  %v314_v34 = vmax.f32 %v272_v18, %v306_v20  ;;  %v315_v52 = vmax.f32 %v273_v21, %v307_v49  ;;  %v371_v60 = vpack.c.bf16 %v330_v47, %v327_v56  ;;  %v3438_v18 = vld [vmem:[#allocation2 + $0x194] sm:$0xf]  ;;  %v2760_v21 = vld [vmem:[#allocation2 + $0x198] sm:$0xf0]  ;;  %v3436_v39 = vld [vmem:[#allocation2 + $0x184] sm:$0xf] }
 0x136   :  { %v331_v48 = vrot.slane %v3924_v50, 2  ;;  %v333_v53 = vrot.slane %v3928_v51, 2  ;;  %v2707_v61 = vor.u32 %v3424_v25, %v2704_v33  ;;  %v369_v9 = vpack.c.bf16 %v3928_v51, %v3924_v50 }
 0x137   :  { %907 = vmatpush.bf16.msrb.mxu3 %v2627_v57  ;;  %v370_v11 = vpack.c.bf16 %v315_v52, %v314_v34  ;;  %v399_v12 = vunpack.c.l.b16 %v371_v60  ;;  %v400_v13 = vunpack.c.h.b16 %v371_v60  ;;  %v335_v16 = vrot.slane %v314_v34, 2 }
 0x138   :  { %v332_v62 = vsel %vm324_vm6, %v326_v22, %v331_v48  ;;  %v334_v2 = vsel %vm324_vm6, %v329_v7, %v333_v53  ;;  %924 = vmatpush.bf16.msra.mxu0 %v2707_v61  ;;  %v337_v54 = vrot.slane %v315_v52, 2  ;;  %v383_v22 = vunpack.c.l.b16 %v369_v9  ;;  %v3483_v61 = vld [vmem:[#allocation4 + $0xf4] sm:$0xf0] }
 0x139   :  { %v361_v3 = vsel %vm116_vm7, 0.0, %v332_v62  ;;  %v362_v6 = vsel %vm116_vm7, 0.0, %v334_v2  ;;  %v2771_v7 = vor.u32 %v3440_v63, %v2768_v0  ;;  %v385_v26 = vunpack.c.l.b16 %v370_v11  ;;  %v2862_v2 = vld [vmem:[#allocation4 + $0x60] sm:$0xf]  ;;  %v3481_v63 = vld [vmem:[#allocation4 + $0xe4] sm:$0xf0] }
 0x13a   :  { %v372_v10 = vpack.c.bf16 %v362_v6, %v361_v3  ;;  %v384_v30 = vunpack.c.h.b16 %v369_v9  ;;  %v386_v31 = vunpack.c.h.b16 %v370_v11  ;;  %v2763_v32 = vor.u32 %v3438_v18, %v2760_v21  ;;  %v3465_v3 = vld [vmem:[#allocation4 + $0x64] sm:$0xf0]  ;;  %v2926_v11 = vld [vmem:[#allocation4 + $0xe0] sm:$0xf]  ;;  %v2998_v21 = vld [vmem:[#allocation4 + $0x170] sm:$0xf] }
 0x13b   :  { %943 = vmatpush.bf16.msra.mxu1 %v2771_v7  ;;  %v349_v35 = vsel %vm324_vm6, %v335_v16, %v325_v55  ;;  %v350_v38 = vsel %vm324_vm6, %v337_v54, %v328_v58  ;;  %v2691_v45 = vor.u32 %v3420_v28, %v2688_v29  ;;  %v389_v46 = vpack.c.b16 %v385_v26, %v383_v22  ;;  %v479_v18 = vld [vmem:[%s4383_s4] sm:$0x3]  ;;  %v3499_v22 = vld [vmem:[#allocation4 + $0x174] sm:$0xf0] }
 0x13c   :  { %v401_v59 = vunpack.c.l.b16 %v372_v10  ;;  %v402_v17 = vunpack.c.h.b16 %v372_v10  ;;  %925 = vmatpush.bf16.msra.mxu0 %v2699_v27  ;;  %v336_v19 = vsel %vm324_vm6, %v331_v48, %v335_v16  ;;  %v338_v36 = vsel %vm324_vm6, %v333_v53, %v337_v54  ;;  %v2934_v53 = vld [vmem:[#allocation4 + $0xf0] sm:$0xf]  ;;  %v2846_v26 = vld [vmem:[#allocation4 + $0x40] sm:$0xf]  ;;  %v3461_v27 = vld [vmem:[#allocation4 + $0x44] sm:$0xf0] }
 0x13d   :  { %v390_v20 = vpack.c.b16 %v386_v31, %v384_v30  ;;  %v365_v37 = vsel %vm118_vm8, 0.0, %v349_v35  ;;  %v366_v41 = vsel %vm118_vm8, 0.0, %v350_v38  ;;  %v2755_v42 = vor.u32 %v3436_v39, %v2752_v44  ;;  %v2918_v16 = vld [vmem:[#allocation4 + $0xd0] sm:$0xf]  ;;  %v2910_v28 = vld [vmem:[#allocation4 + $0xc0] sm:$0xf] }
 0x13e   :  { %v407_v8 = vpack.c.b16 %v401_v59, %v399_v12  ;;  %v408_v23 = vpack.c.b16 %v402_v17, %v400_v13  ;;  %v373_v55 = vpack.c.bf16 %v338_v36, %v336_v19  ;;  %v374_v58 = vpack.c.bf16 %v366_v41, %v365_v37  ;;  %v3479_v59 = vld [vmem:[#allocation4 + $0xd4] sm:$0xf0]  ;;  %v3477_v30 = vld [vmem:[#allocation4 + $0xc4] sm:$0xf0]  ;;  %v3062_v31 = vld [vmem:[#allocation4 + $0x1f0] sm:$0xf] }
 0x13f   :  { %944 = vmatpush.bf16.msra.mxu1 %v2763_v32  ;;  %v2935_v62 = vor.u32 %v3483_v61, %v2934_v53  ;;  %v2863_v10 = vor.u32 %v3465_v3, %v2862_v2  ;;  %v2927_v0 = vor.u32 %v3481_v63, %v2926_v11  ;;  %v2855_v54 = vor.u32 %v3463_v15, %v2854_v14  ;;  %v3515_v32 = vld [vmem:[#allocation4 + $0x1f4] sm:$0xf0]  ;;  %v3497_v19 = vld [vmem:[#allocation4 + $0x164] sm:$0xf0]  ;;  %v2838_v36 = vld [vmem:[#allocation4 + $0x30] sm:$0xf] }
 0x140   :  { %851 = vmatmul.bf16.vlgmr.msrb.gmra.mxu0 %v407_v8  ;;  %870 = vmatmul.bf16.vlgmr.msrb.gmra.mxu1 %v408_v23  ;;  %v403_v49 = vunpack.c.l.b16 %v373_v55  ;;  %v405_v50 = vunpack.c.l.b16 %v374_v58  ;;  %v404_v51 = vunpack.c.h.b16 %v373_v55  ;;  %v406_v56 = vunpack.c.h.b16 %v374_v58  ;;  %v3459_v37 = vld [vmem:[#allocation4 + $0x34] sm:$0xf0]  ;;  %v2902_v41 = vld [vmem:[#allocation4 + $0xb0] sm:$0xf]  ;;  %v3054_v58 = vld [vmem:[#allocation4 + $0x1e0] sm:$0xf] }
 0x141   :  { %926 = vmatpush.bf16.msra.mxu0 %v2691_v45  ;;  %1514 = vmatpush.bf16.msra.mxu3 %v2935_v62  ;;  %v2919_v17 = vor.u32 %v3479_v59, %v2918_v16  ;;  %v2847_v29 = vor.u32 %v3461_v27, %v2846_v26  ;;  %v3989_v35 = vperm.slane %v479_v18, 0  ;;  %v2911_v39 = vor.u32 %v3477_v30, %v2910_v28  ;;  %v3475_v55 = vld [vmem:[#allocation4 + $0xb4] sm:$0xf0]  ;;  %v2830_v61 = vld [vmem:[#allocation4 + $0x20] sm:$0xf] }
 0x142   :  { %v409_v47 = vpack.c.b16 %v405_v50, %v403_v49  ;;  %v410_v57 = vpack.c.b16 %v406_v56, %v404_v51  ;;  %v3063_v44 = vor.u32 %v3515_v32, %v3062_v31  ;;  %v2903_v49 = vor.u32 %v3475_v55, %v2902_v41  ;;  %v3513_v50 = vld [vmem:[#allocation4 + $0x1e4] sm:$0xf0]  ;;  %v2894_v2 = vld [vmem:[#allocation4 + $0xa0] sm:$0xf]  ;;  %v3046_v11 = vld [vmem:[#allocation4 + $0x1d0] sm:$0xf] }
 0x143   :  { %945 = vmatpush.bf16.msra.mxu1 %v2755_v42  ;;  %v2839_v42 = vor.u32 %v3459_v37, %v2838_v36  ;;  %v3457_v62 = vld [vmem:[#allocation4 + $0x24] sm:$0xf0]  ;;  %v4002_v63 = vperm.slane %v479_v18, 1  ;;  %v2886_v26 = vld [vmem:[#allocation4 + $0x90] sm:$0xf]  ;;  %vm2355_vm0 = vcmask 1042432  }
 0x144   :  { %818 = vmatmul.bf16.gmra.mxu2 %v389_v46  ;;  %v3038_v30 = vld [vmem:[#allocation4 + $0x1c0] sm:$0xf]  ;;  %v3453_v37 = vld [vmem:[#allocation4 + $0x4] sm:$0xf0]  ;;  %v3030_v55 = vld [vmem:[#allocation4 + $0x1b0] sm:$0xf] }
 0x145   :  { %837 = vmatmul.bf16.gmra.mxu3 %v390_v20  ;;  %v2878_v41 = vld [vmem:[#allocation4 + $0x80] sm:$0xf] }
 0x146   :  { %1515 = vmatpush.bf16.msra.mxu3 %v2927_v0 }
 0x147   :  { %1552 = vmatpush.bf16.msrb.mxu1 %v3063_v44 }
 0x14a   :  { %1516 = vmatpush.bf16.msra.mxu3 %v2919_v17  ;;  %v2974_v17 = vld [vmem:[#allocation4 + $0x140] sm:$0xf] }
 0x14e   :  { %1517 = vmatpush.bf16.msra.mxu3 %v2911_v39  ;;  %v3509_v39 = vld [vmem:[#allocation4 + $0x1c4] sm:$0xf0] }
 0x150   :  { %856 = vmatmul.bf16.gmra.mxu0 %v409_v47  ;;  %875 = vmatmul.bf16.gmra.mxu1 %v410_v57 }
 0x152   :  { %1518 = vmatpush.bf16.msra.mxu3 %v2903_v49 }
 0x154   :  { %889 = vmatmul.bf16.vlgmr.msrb.gmra.mxu2 %v3910_v40  ;;  %v2870_v40 = vld [vmem:[#allocation4 + $0x70] sm:$0xf] }
 0x155   :  { %908 = vmatmul.bf16.vlgmr.msrb.gmra.mxu3 %v3912_v43  ;;  %v3467_v43 = vld [vmem:[#allocation4 + $0x74] sm:$0xf0] }
 0x156   :  { %v2871_v60 = vor.u32 %v3467_v43, %v2870_v40  ;;  %v3495_v40 = vld [vmem:[#allocation4 + $0x154] sm:$0xf0] }
 0x158   :  { %1495 = vmatpush.bf16.msra.mxu2 %v2871_v60 }
 0x15c   :  { %1496 = vmatpush.bf16.msra.mxu2 %v2863_v10  ;;  %v3473_v10 = vld [vmem:[#allocation4 + $0xa4] sm:$0xf0] }
 0x15d   :  { %v2895_v14 = vor.u32 %v3473_v10, %v2894_v2 }
 0x15f   :  { %1519 = vmatpush.bf16.msra.mxu3 %v2895_v14 }
 0x160   :  { %927 = vmatmul.bf16.vlgmr.msra.gmra.mxu0 %v407_v8  ;;  %946 = vmatmul.bf16.vlgmr.msra.gmra.mxu1 %v408_v23  ;;  %v2999_v23 = vor.u32 %v3499_v22, %v2998_v21  ;;  %v3493_v21 = vld [vmem:[#allocation4 + $0x144] sm:$0xf0] }
 0x161   :  { %1497 = vmatpush.bf16.msra.mxu2 %v2855_v54  ;;  %v2975_v22 = vor.u32 %v3493_v21, %v2974_v17 }
 0x162   :  { %1533 = vmatpush.bf16.msrb.mxu0 %v2999_v23  ;;  %v3455_v23 = vld [vmem:[#allocation4 + $0x14] sm:$0xf0] }
 0x164   :  { %894 = vmatmul.bf16.gmra.mxu2 %v389_v46  ;;  %v2990_v46 = vld [vmem:[#allocation4 + $0x160] sm:$0xf] }
 0x165   :  { %913 = vmatmul.bf16.gmra.mxu3 %v390_v20  ;;  %1498 = vmatpush.bf16.msra.mxu2 %v2847_v29  ;;  %v2991_v20 = vor.u32 %v3497_v19, %v2990_v46  ;;  %v3039_v46 = vor.u32 %v3509_v39, %v3038_v30  ;;  %v3491_v19 = vld [vmem:[#allocation4 + $0x134] sm:$0xf0]  ;;  %v2942_v39 = vld [vmem:[#allocation4 + $0x100] sm:$0xf] }
 0x167   :  { %1534 = vmatpush.bf16.msrb.mxu0 %v2991_v20  ;;  %v2814_v20 = vld [vmem:[#allocation4] sm:$0xf] }
 0x169   :  { %1499 = vmatpush.bf16.msra.mxu2 %v2839_v42  ;;  %v2815_v42 = vor.u32 %v3453_v37, %v2814_v20  ;;  %v2856_v37 = vld [vmem:[#allocation4 + $0x58] sm:$0xf0] }
 0x170   :  { %932 = vmatmul.bf16.gmra.mxu0 %v409_v47  ;;  %951 = vmatmul.bf16.gmra.mxu1 %v410_v57  ;;  %v3055_v47 = vor.u32 %v3513_v50, %v3054_v58  ;;  %v2982_v57 = vld [vmem:[#allocation4 + $0x150] sm:$0xf]  ;;  %v3507_v58 = vld [vmem:[#allocation4 + $0x1b4] sm:$0xf0] }
 0x171   :  { %v2983_v60 = vor.u32 %v3495_v40, %v2982_v57 }
 0x172   :  { %1553 = vmatpush.bf16.msrb.mxu1 %v3055_v47  ;;  %v3031_v47 = vor.u32 %v3507_v58, %v3030_v55 }
 0x173   :  { %1535 = vmatpush.bf16.msrb.mxu0 %v2983_v60  ;;  %v3489_v60 = vld [vmem:[#allocation4 + $0x124] sm:$0xf0] }
 0x177   :  { %1536 = vmatpush.bf16.msrb.mxu0 %v2975_v22  ;;  %v3503_v22 = vld [vmem:[#allocation4 + $0x194] sm:$0xf0] }
 0x1b7   :  { %v3964_v24 = vpop.f32.mrf.mxu2 }
 0x1b8   :  { %v3966_v25 = vpop.f32.mrf.mxu3  ;;  %v815_v51 = vadd.f32 %v3964_v24, %v3989_v35  ;;  %v2831_v24 = vor.u32 %v3457_v62, %v2830_v61  ;;  %v3022_v61 = vld [vmem:[#allocation4 + $0x1a0] sm:$0xf] }
 0x1ba   :  { %v834_v16 = vadd.f32 %v3966_v25, %v815_v51  ;;  %1500 = vmatpush.bf16.msra.mxu2 %v2831_v24  ;;  %v3471_v25 = vld [vmem:[#allocation4 + $0x94] sm:$0xf0]  ;;  %v3466_v24 = vld [vmem:[#allocation4 + $0x74] sm:$0xf] }
 0x1bb   :  { %v2887_v32 = vor.u32 %v3471_v25, %v2886_v26  ;;  %v3480_v25 = vld [vmem:[#allocation4 + $0xe4] sm:$0xf] }
 0x1bd   :  { %v3968_v33 = vpop.f32.mrf.mxu0  ;;  %v3970_v34 = vpop.f32.mrf.mxu1  ;;  %1520 = vmatpush.bf16.msra.mxu3 %v2887_v32  ;;  %v2928_v32 = vld [vmem:[#allocation4 + $0xe8] sm:$0xf0] }
 0x1be   :  { %v853_v18 = vadd.f32 %v3968_v33, %v834_v16  ;;  %v2966_v33 = vld [vmem:[#allocation4 + $0x130] sm:$0xf] }
 0x1bf   :  { %v3972_v48 = vpop.f32.mrf.mxu2  ;;  %v2950_v16 = vld [vmem:[#allocation4 + $0x110] sm:$0xf] }
 0x1c0   :  { %v3974_v52 = vpop.f32.mrf.mxu3  ;;  %v817_v56 = vadd.f32 %v3972_v48, %v3989_v35  ;;  %v3511_v48 = vld [vmem:[#allocation4 + $0x1d4] sm:$0xf0] }
 0x1c1   :  { %v3047_v15 = vor.u32 %v3511_v48, %v3046_v11  ;;  %v2872_v48 = vld [vmem:[#allocation4 + $0x78] sm:$0xf0] }
 0x1c2   :  { %v836_v54 = vadd.f32 %v3974_v52, %v817_v56  ;;  %v2875_v14 = vor.u32 %v3466_v24, %v2872_v48  ;;  %v3476_v24 = vld [vmem:[#allocation4 + $0xc4] sm:$0xf] }
 0x1c3   :  { %1554 = vmatpush.bf16.msrb.mxu1 %v3047_v15  ;;  %v2936_v15 = vld [vmem:[#allocation4 + $0xf8] sm:$0xf0] }
 0x1c5   :  { %v3976_v6 = vpop.f32.mrf.mxu0  ;;  %v3978_v9 = vpop.f32.mrf.mxu1 }
 0x1c6   :  { %v855_v27 = vadd.f32 %v3976_v6, %v836_v54  ;;  %v3487_v54 = vld [vmem:[#allocation4 + $0x114] sm:$0xf0] }
 0x1c7   :  { %v819_v12 = vpop.f32.mrf.mxu2  ;;  %1555 = vmatpush.bf16.msrb.mxu1 %v3039_v46  ;;  %v2951_v21 = vor.u32 %v3487_v54, %v2950_v16  ;;  %v3064_v16 = vld [vmem:[#allocation4 + $0x1f8] sm:$0xf0] }
 0x1c8   :  { %v3980_v13 = vpop.f32.mrf.mxu3  ;;  %v820_v3 = vadd.f32 %v819_v12, %v3989_v35  ;;  %v2822_v12 = vld [vmem:[#allocation4 + $0x10] sm:$0xf] }
 0x1c9   :  { %v2823_v29 = vor.u32 %v3455_v23, %v2822_v12  ;;  %v3014_v12 = vld [vmem:[#allocation4 + $0x190] sm:$0xf] }
 0x1ca   :  { %v839_v28 = vadd.f32 %v3980_v13, %v820_v3  ;;  %v2967_v13 = vor.u32 %v3491_v19, %v2966_v33  ;;  %v3505_v3 = vld [vmem:[#allocation4 + $0x1a4] sm:$0xf0]  ;;  %v3006_v19 = vld [vmem:[#allocation4 + $0x180] sm:$0xf] }
 0x1cb   :  { %1501 = vmatpush.bf16.msra.mxu2 %v2823_v29  ;;  %1556 = vmatpush.bf16.msrb.mxu1 %v3031_v47  ;;  %v2864_v29 = vld [vmem:[#allocation4 + $0x68] sm:$0xf0] }
 0x1cc   :  { %1537 = vmatpush.bf16.msrb.mxu0 %v2967_v13 }
 0x1cd   :  { %v3985_v7 = vpop.f32.mrf.mxu0  ;;  %v3987_v8 = vpop.f32.mrf.mxu1 }
 0x1ce   :  { %v858_v44 = vadd.f32 %v3985_v7, %v839_v28  ;;  %v3469_v7 = vld [vmem:[#allocation4 + $0x84] sm:$0xf0]  ;;  %v3464_v28 = vld [vmem:[#allocation4 + $0x64] sm:$0xf] }
 0x1cf   :  { %v821_v38 = vpop.f32.mrf.mxu2  ;;  %v2879_v56 = vor.u32 %v3469_v7, %v2878_v41  ;;  %1502 = vmatpush.bf16.msra.mxu2 %v2815_v42  ;;  %v3478_v41 = vld [vmem:[#allocation4 + $0xd4] sm:$0xf]  ;;  %v2920_v42 = vld [vmem:[#allocation4 + $0xd8] sm:$0xf0] }
 0x1d0   :  { %v3991_v45 = vpop.f32.mrf.mxu3  ;;  %v822_v52 = vadd.f32 %v821_v38, %v3989_v35  ;;  %v4013_v35 = vadd.f32 %v3970_v34, %v853_v18  ;;  %v4016_v38 = vadd.f32 %v3978_v9, %v855_v27  ;;  %v4020_v57 = vadd.f32 %v3987_v8, %v858_v44  ;;  %v2958_v9 = vld [vmem:[#allocation4 + $0x120] sm:$0xf]  ;;  %v3485_v44 = vld [vmem:[#allocation4 + $0x104] sm:$0xf0] }
 0x1d1   :  { %1521 = vmatpush.bf16.msra.mxu3 %v2879_v56  ;;  %v3023_v8 = vor.u32 %v3505_v3, %v3022_v61  ;;  %v2943_v33 = vor.u32 %v3485_v44, %v2942_v39  ;;  %v2848_v3 = vld [vmem:[#allocation4 + $0x48] sm:$0xf0] }
 0x1d2   :  { %v841_v49 = vadd.f32 %v3991_v45, %v822_v52  ;;  %v2959_v45 = vor.u32 %v3489_v60, %v2958_v9  ;;  %v957_v10 = vmax.f32 %v4013_v35, 0.0  ;;  %v959_v11 = vmax.f32 %v4016_v38, 0.0  ;;  %v3000_v9 = vld [vmem:[#allocation4 + $0x178] sm:$0xf0]  ;;  %v3460_v60 = vld [vmem:[#allocation4 + $0x44] sm:$0xf] }
 0x1d3   :  { %1571 = vmatpush.bf16.msrb.mxu2 %v2875_v14  ;;  %1557 = vmatpush.bf16.msrb.mxu1 %v3023_v8  ;;  %v3015_v52 = vor.u32 %v3503_v22, %v3014_v12  ;;  %v2912_v14 = vld [vmem:[#allocation4 + $0xc8] sm:$0xf0] }
 0x1d4   :  { %1538 = vmatpush.bf16.msrb.mxu0 %v2959_v45  ;;  %v4037_v7 = vrot.slane %v957_v10, 2  ;;  %v974_v55 = vrot.slane %v959_v11, 2 }
 0x1d5   :  { %v3997_v43 = vpop.f32.mrf.mxu0  ;;  %v3999_v53 = vpop.f32.mrf.mxu1 }
 0x1d6   :  { %v860_v62 = vadd.f32 %v3997_v43, %v841_v49  ;;  %v961_v43 = vmax.f32 %v4020_v57, 0.0  ;;  %v975_v39 = vsel %vm324_vm6, %v4037_v7, %v974_v55  ;;  %v3470_v57 = vld [vmem:[#allocation4 + $0x94] sm:$0xf] }
 0x1d7   :  { %v890_v0 = vpop.f32.mrf.mxu2  ;;  %1558 = vmatpush.bf16.msrb.mxu1 %v3015_v52  ;;  %v2840_v52 = vld [vmem:[#allocation4 + $0x38] sm:$0xf0] }
 0x1d8   :  { %v909_v59 = vpop.f32.mrf.mxu3  ;;  %v891_v31 = vadd.f32 %v890_v0, %v4002_v63  ;;  %v3482_v0 = vld [vmem:[#allocation4 + $0xf4] sm:$0xf]  ;;  %v4028_v23 = vadd.f32 %v3999_v53, %v860_v62  ;;  %1539 = vmatpush.bf16.msrb.mxu0 %v2951_v21  ;;  %v2931_v53 = vor.u32 %v3480_v25, %v2928_v32  ;;  %v979_v61 = vrot.slane %v961_v43, 2  ;;  %v2904_v32 = vld [vmem:[#allocation4 + $0xb8] sm:$0xf0] }
 0x1d9   :  { %v2939_v17 = vor.u32 %v3482_v0, %v2936_v15  ;;  %v2851_v0 = vor.u32 %v3460_v60, %v2848_v3  ;;  %v3514_v15 = vld [vmem:[#allocation4 + $0x1f4] sm:$0xf]  ;;  %v2915_v21 = vor.u32 %v3476_v24, %v2912_v14  ;;  %v2896_v60 = vld [vmem:[#allocation4 + $0xa8] sm:$0xf0]  ;;  %v3492_v3 = vld [vmem:[#allocation4 + $0x144] sm:$0xf] }
 0x1da   :  { %v910_v50 = vadd.f32 %v909_v59, %v891_v31  ;;  %v2867_v31 = vor.u32 %v3464_v28, %v2864_v29  ;;  %v963_v58 = vmax.f32 %v4028_v23, 0.0  ;;  %v3067_v22 = vor.u32 %v3514_v15, %v3064_v16  ;;  %v2976_v24 = vld [vmem:[#allocation4 + $0x148] sm:$0xf0]  ;;  %v2824_v14 = vld [vmem:[#allocation4 + $0x18] sm:$0xf0] }
 0x1db   :  { %1590 = vmatpush.bf16.msrb.mxu3 %v2939_v17  ;;  %v980_v44 = vsel %vm324_vm6, %v974_v55, %v979_v61 }
 0x1dc   :  { %1572 = vmatpush.bf16.msrb.mxu2 %v2867_v31  ;;  %1540 = vmatpush.bf16.msrb.mxu0 %v2943_v33  ;;  %v4052_v54 = vrot.slane %v963_v58, 2  ;;  %v3474_v31 = vld [vmem:[#allocation4 + $0xb4] sm:$0xf]  ;;  %v3056_v33 = vld [vmem:[#allocation4 + $0x1e8] sm:$0xf0] }
 0x1dd   :  { %v928_v6 = vpop.f32.mrf.mxu0  ;;  %v947_v36 = vpop.f32.mrf.mxu1 }
 0x1de   :  { %v929_v2 = vadd.f32 %v928_v6, %v910_v50  ;;  %v3501_v6 = vld [vmem:[#allocation4 + $0x184] sm:$0xf0] }
 0x1df   :  { %v892_v51 = vpop.f32.mrf.mxu2  ;;  %1591 = vmatpush.bf16.msrb.mxu3 %v2931_v53  ;;  %v3007_v47 = vor.u32 %v3501_v6, %v3006_v19  ;;  %v3512_v53 = vld [vmem:[#allocation4 + $0x1e4] sm:$0xf]  ;;  %v984_v19 = vsel %vm324_vm6, %v979_v61, %v4052_v54  ;;  %v3510_v61 = vld [vmem:[#allocation4 + $0x1d4] sm:$0xf] }
 0x1e0   :  { %v893_v34 = vadd.f32 %v892_v51, %v4002_v63  ;;  %v911_v40 = vpop.f32.mrf.mxu3  ;;  %v4030_v26 = vadd.f32 %v947_v36, %v929_v2  ;;  %v3462_v36 = vld [vmem:[#allocation4 + $0x54] sm:$0xf] }
 0x1e1   :  { %v2859_v50 = vor.u32 %v3462_v36, %v2856_v37  ;;  %1559 = vmatpush.bf16.msrb.mxu1 %v3007_v47  ;;  %v3059_v36 = vor.u32 %v3512_v53, %v3056_v33  ;;  %v2984_v37 = vld [vmem:[#allocation4 + $0x158] sm:$0xf0]  ;;  %v3472_v47 = vld [vmem:[#allocation4 + $0xa4] sm:$0xf] }
 0x1e2   :  { %v912_v59 = vadd.f32 %v911_v40, %v893_v34  ;;  %v958_v51 = vmax.f32 %v4030_v26, 0.0  ;;  %v2923_v34 = vor.u32 %v3478_v41, %v2920_v42  ;;  %v3498_v40 = vld [vmem:[#allocation4 + $0x174] sm:$0xf]  ;;  %v3496_v26 = vld [vmem:[#allocation4 + $0x164] sm:$0xf]  ;;  %v2899_v38 = vor.u32 %v3472_v47, %v2896_v60 }
 0x1e3   :  { %v3003_v45 = vor.u32 %v3498_v40, %v3000_v9  ;;  %1573 = vmatpush.bf16.msrb.mxu2 %v2859_v50  ;;  %v2832_v50 = vld [vmem:[#allocation4 + $0x28] sm:$0xf0]  ;;  %v3452_v53 = vld [vmem:[#allocation4 + $0x4] sm:$0xf]  ;;  %v3032_v47 = vld [vmem:[#allocation4 + $0x1b8] sm:$0xf0]  ;;  %v997_v60 = vsel %vm324_vm6, %v4052_v54, %v4037_v7 }
 0x1e4   :  { %1592 = vmatpush.bf16.msrb.mxu3 %v2923_v34  ;;  %v4072_v34 = vmax.f32 %v957_v10, %v975_v39  ;;  %v3048_v10 = vld [vmem:[#allocation4 + $0x1d8] sm:$0xf0]  ;;  %v3488_v54 = vld [vmem:[#allocation4 + $0x124] sm:$0xf] }
 0x1e5   :  { %v930_v18 = vpop.f32.mrf.mxu0  ;;  %v949_v27 = vpop.f32.mrf.mxu1  ;;  %1609 = vmatpush.bf16.msra.mxu0 %v3003_v45  ;;  %1628 = vmatpush.bf16.msra.mxu1 %v3067_v22 }
 0x1e6   :  { %v931_v30 = vadd.f32 %v930_v18, %v912_v59  ;;  %v4054_v59 = vrot.slane %v958_v51, 2  ;;  %v2992_v18 = vld [vmem:[#allocation4 + $0x168] sm:$0xf0] }
 0x1e7   :  { %v895_v46 = vpop.f32.mrf.mxu2  ;;  %1574 = vmatpush.bf16.msrb.mxu2 %v2851_v0  ;;  %v3454_v0 = vld [vmem:[#allocation4 + $0x14] sm:$0xf] }
 0x1e8   :  { %v4032_v13 = vadd.f32 %v949_v27, %v931_v30  ;;  %v896_v20 = vadd.f32 %v895_v46, %v4002_v63  ;;  %v914_v49 = vpop.f32.mrf.mxu3  ;;  %v3458_v27 = vld [vmem:[#allocation4 + $0x34] sm:$0xf]  ;;  %v2995_v30 = vor.u32 %v3496_v26, %v2992_v18  ;;  %1593 = vmatpush.bf16.msrb.mxu3 %v2915_v21  ;;  %v2888_v21 = vld [vmem:[#allocation4 + $0x98] sm:$0xf0] }
 0x1e9   :  { %v2843_v46 = vor.u32 %v3458_v27, %v2840_v52  ;;  %1629 = vmatpush.bf16.msra.mxu1 %v3059_v36  ;;  %v2827_v27 = vor.u32 %v3454_v0, %v2824_v14  ;;  %v2816_v36 = vld [vmem:[#allocation4 + $0x8] sm:$0xf0]  ;;  %v1005_v0 = vmax.f32 %v963_v58, %v997_v60 }
 0x1ea   :  { %v960_v56 = vmax.f32 %v4032_v13, 0.0  ;;  %v915_v2 = vadd.f32 %v914_v49, %v896_v20  ;;  %v3494_v20 = vld [vmem:[#allocation4 + $0x154] sm:$0xf]  ;;  %1610 = vmatpush.bf16.msra.mxu0 %v2995_v30  ;;  %v3456_v49 = vld [vmem:[#allocation4 + $0x24] sm:$0xf]  ;;  %v2891_v30 = vor.u32 %v3470_v57, %v2888_v21 }
 0x1eb   :  { %v2987_v55 = vor.u32 %v3494_v20, %v2984_v37  ;;  %1575 = vmatpush.bf16.msrb.mxu2 %v2843_v46  ;;  %v2835_v35 = vor.u32 %v3456_v49, %v2832_v50  ;;  %v2968_v46 = vld [vmem:[#allocation4 + $0x138] sm:$0xf0]  ;;  %v3468_v20 = vld [vmem:[#allocation4 + $0x84] sm:$0xf]  ;;  %v2880_v49 = vld [vmem:[#allocation4 + $0x88] sm:$0xf0] }
 0x1ec   :  { %v4048_v62 = vrot.slane %v960_v56, 2  ;;  %v3506_v50 = vld [vmem:[#allocation4 + $0x1b4] sm:$0xf]  ;;  %v2883_v7 = vor.u32 %v3468_v20, %v2880_v49 }
 0x1ed   :  { %v933_v8 = vpop.f32.mrf.mxu0  ;;  %v952_v48 = vpop.f32.mrf.mxu1 }
 0x1ee   :  { %v934_v17 = vadd.f32 %v933_v8, %v915_v2  ;;  %v978_v28 = vsel %vm324_vm6, %v4054_v59, %v4048_v62  ;;  %v4084_v2 = vmax.f32 %v961_v43, %v984_v19  ;;  %1611 = vmatpush.bf16.msra.mxu0 %v2987_v55  ;;  %v2819_v55 = vor.u32 %v3452_v53, %v2816_v36 }
 0x1ef   :  { %v897_v12 = vpop.f32.mrf.mxu2  ;;  %v4068_v41 = vmax.f32 %v958_v51, %v978_v28  ;;  %v4080_v51 = vmax.f32 %v959_v11, %v980_v44  ;;  %v3051_v11 = vor.u32 %v3510_v61, %v3048_v10  ;;  %1576 = vmatpush.bf16.msrb.mxu2 %v2835_v35  ;;  %v3490_v44 = vld [vmem:[#allocation4 + $0x134] sm:$0xf]  ;;  %v2960_v10 = vld [vmem:[#allocation4 + $0x128] sm:$0xf0] }
 0x1f0   :  { %v4059_v29 = vadd.f32 %v952_v48, %v934_v17  ;;  %v898_v25 = vadd.f32 %v897_v12, %v4002_v63  ;;  %v2907_v63 = vor.u32 %v3474_v31, %v2904_v32  ;;  %v916_v42 = vpop.f32.mrf.mxu3  ;;  %v2979_v17 = vor.u32 %v3492_v3, %v2976_v24  ;;  %v3508_v12 = vld [vmem:[#allocation4 + $0x1c4] sm:$0xf]  ;;  %v3024_v24 = vld [vmem:[#allocation4 + $0x1a8] sm:$0xf0] }
 0x1f1   :  { %v1057_v43 = vpack.c.bf16 %v4068_v41, %v4072_v34  ;;  %v1016_v26 = vrot.slane %v4080_v51, 4  ;;  %1630 = vmatpush.bf16.msra.mxu1 %v3051_v11  ;;  %v1018_v33 = vrot.slane %v4068_v41, 4  ;;  %v2952_v11 = vld [vmem:[#allocation4 + $0x118] sm:$0xf0] }
 0x1f2   :  { %v962_v6 = vmax.f32 %v4059_v29, 0.0  ;;  %v917_v9 = vadd.f32 %v916_v42, %v898_v25  ;;  %1594 = vmatpush.bf16.msrb.mxu3 %v2907_v63  ;;  %1612 = vmatpush.bf16.msra.mxu0 %v2979_v17  ;;  %v2971_v63 = vor.u32 %v3490_v44, %v2968_v46  ;;  %v3035_v29 = vor.u32 %v3506_v50, %v3032_v47  ;;  %v3016_v17 = vld [vmem:[#allocation4 + $0x198] sm:$0xf0] }
 0x1f3   :  { %v1069_v52 = vunpack.c.l.b16 %v1057_v43  ;;  %v1070_v32 = vunpack.c.h.b16 %v1057_v43  ;;  %1577 = vmatpush.bf16.msrb.mxu2 %v2827_v27 }
 0x1f4   :  { %v4076_v40 = vrot.slane %v962_v6, 2 }
 0x1f5   :  { %v935_v45 = vpop.f32.mrf.mxu0  ;;  %v954_v16 = vpop.f32.mrf.mxu1 }
 0x1f6   :  { %v982_v8 = vsel %vm324_vm6, %v4048_v62, %v4076_v40  ;;  %v936_v48 = vadd.f32 %v935_v45, %v917_v9  ;;  %v3040_v62 = vld [vmem:[#allocation4 + $0x1c8] sm:$0xf0]  ;;  %1595 = vmatpush.bf16.msrb.mxu3 %v2899_v38  ;;  %v1015_v9 = vrot.slane %v4072_v34, 4  ;;  %1613 = vmatpush.bf16.msra.mxu0 %v2971_v63  ;;  %v3486_v38 = vld [vmem:[#allocation4 + $0x114] sm:$0xf] }
 0x1f7   :  { %v4093_v15 = vmax.f32 %v960_v56, %v982_v8  ;;  %v3043_v13 = vor.u32 %v3508_v12, %v3040_v62  ;;  %v1021_v56 = vrot.slane %v4084_v2, 4  ;;  %1578 = vmatpush.bf16.msrb.mxu2 %v2819_v55  ;;  %v2955_v23 = vor.u32 %v3486_v38, %v2952_v11  ;;  %v3190_v11 = vld [vmem:[#allocation6 + $0xf0] sm:$0xf] }
 0x1f8   :  { %v955_v22 = vadd.f32 %v954_v16, %v936_v48  ;;  %v1017_v48 = vsel %vm221_vm3, %v1015_v9, %v1016_v26  ;;  %v3502_v16 = vld [vmem:[#allocation4 + $0x194] sm:$0xf] }
 0x1f9   :  { %v1058_v18 = vpack.c.bf16 %v4093_v15, %v4080_v51  ;;  %v1019_v28 = vrot.slane %v4093_v15, 4  ;;  %1631 = vmatpush.bf16.msra.mxu1 %v3043_v13  ;;  %v3019_v27 = vor.u32 %v3502_v16, %v3016_v17  ;;  %v3118_v16 = vld [vmem:[#allocation6 + $0x60] sm:$0xf]  ;;  %v3529_v17 = vld [vmem:[#allocation6 + $0x64] sm:$0xf0] }
 0x1fa   :  { %v964_v25 = vmax.f32 %v955_v22, 0.0  ;;  %1596 = vmatpush.bf16.msrb.mxu3 %v2891_v30  ;;  %v3484_v22 = vld [vmem:[#allocation4 + $0x104] sm:$0xf] }
 0x1fb   :  { %v1071_v31 = vunpack.c.l.b16 %v1058_v18  ;;  %v1072_v39 = vunpack.c.h.b16 %v1058_v18  ;;  %v1020_v35 = vsel %vm221_vm3, %v1018_v33, %v1019_v28 }
 0x1fc   :  { %v985_v19 = vrot.slane %v964_v25, 2  ;;  %v1061_v14 = vpack.c.bf16 %v1020_v35, %v1017_v48 }
 0x1fd   :  { %v4102_v37 = vpack.c.b16 %v1071_v31, %v1069_v52  ;;  %v4104_v42 = vpack.c.b16 %v1072_v39, %v1070_v32  ;;  %1632 = vmatpush.bf16.msra.mxu1 %v3035_v29  ;;  %v3500_v52 = vld [vmem:[#allocation4 + $0x184] sm:$0xf]  ;;  %v3008_v31 = vld [vmem:[#allocation4 + $0x188] sm:$0xf0]  ;;  %v1025_v32 = vrot.slane %v1005_v0, 4 }
 0x1fe   :  { %v986_v61 = vsel %vm324_vm6, %v4076_v40, %v985_v19  ;;  %v998_v51 = vsel %vm324_vm6, %v985_v19, %v4054_v59  ;;  %v3504_v40 = vld [vmem:[#allocation4 + $0x1a4] sm:$0xf]  ;;  %v1022_v59 = vsel %vm221_vm3, %v1016_v26, %v1021_v56  ;;  %1597 = vmatpush.bf16.msrb.mxu3 %v2883_v7  ;;  %v2944_v26 = vld [vmem:[#allocation4 + $0x108] sm:$0xf0]  ;;  %v1089_v18 = vunpack.c.l.b16 %v1061_v14 }
 0x1ff   :  { %v4116_v45 = vmax.f32 %v962_v6, %v986_v61  ;;  %1503 = vmatmul.bf16.vlgmr.msra.gmra.mxu2 %v4102_v37  ;;  %1522 = vmatmul.bf16.vlgmr.msra.gmra.mxu3 %v4104_v42  ;;  %v1006_v3 = vmax.f32 %v964_v25, %v998_v51  ;;  %v2963_v6 = vor.u32 %v3488_v54, %v2960_v10  ;;  %v1051_v15 = vsel %vm120_vm9, 0.0, %v1022_v59 }
 0x200   :  { %v3027_v57 = vor.u32 %v3504_v40, %v3024_v24  ;;  %v1090_v25 = vunpack.c.h.b16 %v1061_v14  ;;  %v2947_v46 = vor.u32 %v3484_v22, %v2944_v26  ;;  %v3011_v20 = vor.u32 %v3500_v52, %v3008_v31  ;;  %v3545_v22 = vld [vmem:[#allocation6 + $0xe4] sm:$0xf0] }
 0x201   :  { %v1023_v8 = vrot.slane %v4116_v45, 4  ;;  %v1060_v21 = vpack.c.bf16 %v1006_v3, %v1005_v0  ;;  %v1059_v62 = vpack.c.bf16 %v4116_v45, %v4084_v2  ;;  %1614 = vmatpush.bf16.msra.mxu0 %v2963_v6  ;;  %v1027_v13 = vrot.slane %v1006_v3, 4  ;;  %v3126_v6 = vld [vmem:[#allocation6 + $0x70] sm:$0xf]  ;;  %v3547_v0 = vld [vmem:[#allocation6 + $0xf4] sm:$0xf0] }
 0x202   :  { %1633 = vmatpush.bf16.msra.mxu1 %v3027_v57  ;;  %v1039_v47 = vsel %vm221_vm3, %v1025_v32, %v1015_v9  ;;  %v1026_v41 = vsel %vm221_vm3, %v1021_v56, %v1025_v32  ;;  %v3191_v14 = vor.u32 %v3547_v0, %v3190_v11  ;;  %v1169_v57 = vld [vmem:[%s4385_s6] sm:$0x3]  ;;  %v3110_v32 = vld [vmem:[#allocation6 + $0x50] sm:$0xf] }
 0x203   :  { %v1024_v43 = vsel %vm221_vm3, %v1019_v28, %v1023_v8  ;;  %v1073_v39 = vunpack.c.l.b16 %v1059_v62  ;;  %v1075_v44 = vunpack.c.l.b16 %v1060_v21  ;;  %v1074_v63 = vunpack.c.h.b16 %v1059_v62  ;;  %v3230_v11 = vld [vmem:[#allocation6 + $0x140] sm:$0xf] }
 0x204   :  { %v1052_v12 = vsel %vm120_vm9, 0.0, %v1024_v43  ;;  %v1076_v36 = vunpack.c.h.b16 %v1060_v21  ;;  %v1040_v55 = vsel %vm221_vm3, %v1027_v13, %v1018_v33  ;;  %v1028_v60 = vsel %vm221_vm3, %v1023_v8, %v1027_v13  ;;  %2197 = vmatpush.bf16.msra.mxu3 %v3191_v14  ;;  %v3254_v43 = vld [vmem:[#allocation6 + $0x170] sm:$0xf] }
 0x205   :  { %v1062_v58 = vpack.c.bf16 %v1052_v12, %v1051_v15  ;;  %1615 = vmatpush.bf16.msra.mxu0 %v2955_v23  ;;  %v1079_v49 = vpack.c.b16 %v1075_v44, %v1073_v39  ;;  %v1056_v61 = vsel %vm122_vm10, 0.0, %v1040_v55  ;;  %v1055_v33 = vsel %vm122_vm10, 0.0, %v1039_v47  ;;  %v3563_v15 = vld [vmem:[#allocation6 + $0x174] sm:$0xf0]  ;;  %v3318_v12 = vld [vmem:[#allocation6 + $0x1f0] sm:$0xf] }
 0x206   :  { %1634 = vmatpush.bf16.msra.mxu1 %v3019_v27  ;;  %v1080_v50 = vpack.c.b16 %v1076_v36, %v1074_v63  ;;  %v1063_v51 = vpack.c.bf16 %v1028_v60, %v1026_v41  ;;  %v1064_v45 = vpack.c.bf16 %v1056_v61, %v1055_v33  ;;  %v3255_v21 = vor.u32 %v3563_v15, %v3254_v43  ;;  %v3579_v23 = vld [vmem:[#allocation6 + $0x1f4] sm:$0xf0]  ;;  %v3174_v63 = vld [vmem:[#allocation6 + $0xd0] sm:$0xf]  ;;  %v3102_v47 = vld [vmem:[#allocation6 + $0x40] sm:$0xf] }
 0x207   :  { %v1091_v28 = vunpack.c.l.b16 %v1062_v58  ;;  %v1092_v30 = vunpack.c.h.b16 %v1062_v58  ;;  %v3119_v62 = vor.u32 %v3529_v17, %v3118_v16  ;;  %v3182_v58 = vld [vmem:[#allocation6 + $0xe0] sm:$0xf]  ;;  %v3319_v27 = vor.u32 %v3579_v23, %v3318_v12  ;;  %v3527_v39 = vld [vmem:[#allocation6 + $0x54] sm:$0xf0]  ;;  %v3525_v60 = vld [vmem:[#allocation6 + $0x44] sm:$0xf0] }
 0x208   :  { %v1093_v35 = vunpack.c.l.b16 %v1063_v51  ;;  %v1095_v7 = vunpack.c.l.b16 %v1064_v45  ;;  %v1094_v54 = vunpack.c.h.b16 %v1063_v51  ;;  %v1096_v10 = vunpack.c.h.b16 %v1064_v45  ;;  %v3543_v36 = vld [vmem:[#allocation6 + $0xd4] sm:$0xf0]  ;;  %v3302_v41 = vld [vmem:[#allocation6 + $0x1d0] sm:$0xf]  ;;  %v3294_v16 = vld [vmem:[#allocation6 + $0x1c0] sm:$0xf] }
 0x209   :  { %v1097_v53 = vpack.c.b16 %v1091_v28, %v1089_v18  ;;  %v1098_v19 = vpack.c.b16 %v1092_v30, %v1090_v25  ;;  %1616 = vmatpush.bf16.msra.mxu0 %v2947_v46  ;;  %v3183_v13 = vor.u32 %v3545_v22, %v3182_v58  ;;  %v4175_v28 = vperm.slane %v1169_v57, 0  ;;  %v3246_v25 = vld [vmem:[#allocation6 + $0x160] sm:$0xf]  ;;  %v3561_v30 = vld [vmem:[#allocation6 + $0x164] sm:$0xf0] }
 0x20a   :  { %1635 = vmatpush.bf16.msra.mxu1 %v3011_v20  ;;  %v1099_v34 = vpack.c.b16 %v1095_v7, %v1093_v35  ;;  %v1100_v40 = vpack.c.b16 %v1096_v10, %v1094_v54  ;;  %v3247_v44 = vor.u32 %v3561_v30, %v3246_v25  ;;  %v3310_v46 = vld [vmem:[#allocation6 + $0x1e0] sm:$0xf]  ;;  %v3175_v55 = vor.u32 %v3543_v36, %v3174_v63  ;;  %v3575_v35 = vld [vmem:[#allocation6 + $0x1d4] sm:$0xf0]  ;;  %v3541_v54 = vld [vmem:[#allocation6 + $0xc4] sm:$0xf0] }
 0x20b   :  { %1541 = vmatmul.bf16.vlgmr.msrb.gmra.mxu0 %v1097_v53  ;;  %1560 = vmatmul.bf16.vlgmr.msrb.gmra.mxu1 %v1098_v19  ;;  %v3103_v45 = vor.u32 %v3525_v60, %v3102_v47  ;;  %v3166_v7 = vld [vmem:[#allocation6 + $0xc0] sm:$0xf]  ;;  %v105_v10 = vadd.s32 16, %v3792_v1  ;;  %v3094_v14 = vld [vmem:[#allocation6 + $0x30] sm:$0xf] }
 0x20c   :  { %2198 = vmatpush.bf16.msra.mxu3 %v3183_v13  ;;  %v3523_v43 = vld [vmem:[#allocation6 + $0x34] sm:$0xf0]  ;;  %v3158_v23 = vld [vmem:[#allocation6 + $0xb0] sm:$0xf]  ;;  %v3150_v36 = vld [vmem:[#allocation6 + $0xa0] sm:$0xf] }
 0x20d   :  { %2216 = vmatpush.bf16.msrb.mxu0 %v3255_v21  ;;  %v3539_v58 = vld [vmem:[#allocation6 + $0xb4] sm:$0xf0]  ;;  %v109_v22 = vand.u32 15, %v105_v10  ;;  %v3214_v10 = vld [vmem:[#allocation6 + $0x120] sm:$0xf] }
 0x20e   :  { %2235 = vmatpush.bf16.msrb.mxu1 %v3319_v27  ;;  %v3159_v13 = vor.u32 %v3539_v58, %v3158_v23  ;;  %v3571_v63 = vld [vmem:[#allocation6 + $0x1b4] sm:$0xf0] }
 0x20f   :  { %1508 = vmatmul.bf16.gmra.mxu2 %v1079_v49  ;;  %1527 = vmatmul.bf16.gmra.mxu3 %v1080_v50 }
 0x210   :  { %2199 = vmatpush.bf16.msra.mxu3 %v3175_v55 }
 0x211   :  { %2217 = vmatpush.bf16.msrb.mxu0 %v3247_v44 }
 0x21b   :  { %1546 = vmatmul.bf16.gmra.mxu0 %v1099_v34  ;;  %1565 = vmatmul.bf16.gmra.mxu1 %v1100_v40 }
 0x21f   :  { %1579 = vmatmul.bf16.vlgmr.msrb.gmra.mxu2 %v4102_v37  ;;  %1598 = vmatmul.bf16.vlgmr.msrb.gmra.mxu3 %v4104_v42  ;;  %v3531_v37 = vld [vmem:[#allocation6 + $0x74] sm:$0xf0] }
 0x220   :  { %v3127_v24 = vor.u32 %v3531_v37, %v3126_v6  ;;  %v3303_v6 = vor.u32 %v3575_v35, %v3302_v41  ;;  %v3167_v37 = vor.u32 %v3541_v54, %v3166_v7  ;;  %v107_v41 = vand.u32 15, %v3792_v1 }
 0x222   :  { %2178 = vmatpush.bf16.msra.mxu2 %v3127_v24  ;;  %v4188_v24 = vperm.slane %v1169_v57, 1  ;;  %2200 = vmatpush.bf16.msra.mxu3 %v3167_v37  ;;  %v3095_v57 = vor.u32 %v3523_v43, %v3094_v14 }
 0x226   :  { %2179 = vmatpush.bf16.msra.mxu2 %v3119_v62  ;;  %v3573_v62 = vld [vmem:[#allocation6 + $0x1c4] sm:$0xf0]  ;;  %2201 = vmatpush.bf16.msra.mxu3 %v3159_v13  ;;  %v3134_v13 = vld [vmem:[#allocation6 + $0x80] sm:$0xf] }
 0x227   :  { %v3295_v27 = vor.u32 %v3573_v62, %v3294_v16  ;;  %v3270_v62 = vld [vmem:[#allocation6 + $0x190] sm:$0xf] }
 0x22b   :  { %1617 = vmatmul.bf16.vlgmr.msra.gmra.mxu0 %v1097_v53  ;;  %1636 = vmatmul.bf16.vlgmr.msra.gmra.mxu1 %v1098_v19  ;;  %v3111_v53 = vor.u32 %v3527_v39, %v3110_v32  ;;  %v3577_v19 = vld [vmem:[#allocation6 + $0x1e4] sm:$0xf0]  ;;  %v3222_v32 = vld [vmem:[#allocation6 + $0x130] sm:$0xf] }
 0x22c   :  { %v3311_v20 = vor.u32 %v3577_v19, %v3310_v46  ;;  %v3521_v39 = vld [vmem:[#allocation6 + $0x24] sm:$0xf0]  ;;  %v3286_v46 = vld [vmem:[#allocation6 + $0x1b0] sm:$0xf] }
 0x22d   :  { %2180 = vmatpush.bf16.msra.mxu2 %v3111_v53 }
 0x22e   :  { %2236 = vmatpush.bf16.msrb.mxu1 %v3311_v20  ;;  %v3537_v20 = vld [vmem:[#allocation6 + $0xa4] sm:$0xf0] }
 0x22f   :  { %1584 = vmatmul.bf16.gmra.mxu2 %v1079_v49  ;;  %1603 = vmatmul.bf16.gmra.mxu3 %v1080_v50  ;;  %v3238_v49 = vld [vmem:[#allocation6 + $0x150] sm:$0xf]  ;;  %v3559_v50 = vld [vmem:[#allocation6 + $0x154] sm:$0xf0]  ;;  %v3151_v47 = vor.u32 %v3537_v20, %v3150_v36 }
 0x230   :  { %v3239_v61 = vor.u32 %v3559_v50, %v3238_v49  ;;  %v3287_v50 = vor.u32 %v3571_v63, %v3286_v46  ;;  %v3128_v63 = vld [vmem:[#allocation6 + $0x78] sm:$0xf0] }
 0x231   :  { %2181 = vmatpush.bf16.msra.mxu2 %v3103_v45  ;;  %2202 = vmatpush.bf16.msra.mxu3 %v3151_v47  ;;  %v3192_v47 = vld [vmem:[#allocation6 + $0xf8] sm:$0xf0] }
 0x232   :  { %2218 = vmatpush.bf16.msrb.mxu0 %v3239_v61  ;;  %2237 = vmatpush.bf16.msrb.mxu1 %v3303_v6  ;;  %v3553_v6 = vld [vmem:[#allocation6 + $0x124] sm:$0xf0] }
 0x233   :  { %v3215_v37 = vor.u32 %v3553_v6, %v3214_v10  ;;  %v3578_v10 = vld [vmem:[#allocation6 + $0x1f4] sm:$0xf]  ;;  %v3320_v6 = vld [vmem:[#allocation6 + $0x1f8] sm:$0xf0] }
 0x235   :  { %2182 = vmatpush.bf16.msra.mxu2 %v3095_v57  ;;  %v3551_v57 = vld [vmem:[#allocation6 + $0x114] sm:$0xf0] }
 0x236   :  { %2238 = vmatpush.bf16.msrb.mxu1 %v3295_v27  ;;  %v3567_v27 = vld [vmem:[#allocation6 + $0x194] sm:$0xf0] }
 0x23a   :  { %2239 = vmatpush.bf16.msrb.mxu1 %v3287_v50  ;;  %v3546_v50 = vld [vmem:[#allocation6 + $0xf4] sm:$0xf] }
 0x23b   :  { %1622 = vmatmul.bf16.gmra.mxu0 %v1099_v34  ;;  %1641 = vmatmul.bf16.gmra.mxu1 %v1100_v40 }
 0x282   :  { %v1504_v2 = vpop.f32.mrf.mxu2  ;;  %v4152_v56 = vpop.f32.mrf.mxu3 }
 0x283   :  { %v1505_v33 = vadd.f32 %v1504_v2, %v4175_v28  ;;  %v3557_v2 = vld [vmem:[#allocation6 + $0x144] sm:$0xf0] }
 0x284   :  { %v3231_v15 = vor.u32 %v3557_v2, %v3230_v11  ;;  %v3569_v11 = vld [vmem:[#allocation6 + $0x1a4] sm:$0xf0]  ;;  %v3142_v2 = vld [vmem:[#allocation6 + $0x90] sm:$0xf] }
 0x285   :  { %v1524_v17 = vadd.f32 %v4152_v56, %v1505_v33  ;;  %v3555_v56 = vld [vmem:[#allocation6 + $0x134] sm:$0xf0]  ;;  %v3078_v33 = vld [vmem:[#allocation6 + $0x10] sm:$0xf] }
 0x286   :  { %2219 = vmatpush.bf16.msrb.mxu0 %v3231_v15  ;;  %v3223_v44 = vor.u32 %v3555_v56, %v3222_v32  ;;  %v3198_v56 = vld [vmem:[#allocation6 + $0x100] sm:$0xf] }
 0x288   :  { %v4154_v9 = vpop.f32.mrf.mxu0  ;;  %v4156_v3 = vpop.f32.mrf.mxu1 }
 0x289   :  { %v1543_v25 = vadd.f32 %v4154_v9, %v1524_v17  ;;  %v124_v9 = vand.u32 3, %v3796_v4 }
 0x28a   :  { %v1506_v59 = vpop.f32.mrf.mxu2  ;;  %v4158_v29 = vpop.f32.mrf.mxu3  ;;  %2220 = vmatpush.bf16.msrb.mxu0 %v3223_v44 }
 0x28b   :  { %v1507_v51 = vadd.f32 %v1506_v59, %v4175_v28  ;;  %v4202_v60 = vadd.f32 %v4156_v3, %v1543_v25  ;;  %vm4217_vm12 = vcmp.eq.s32.totalorder %v124_v9, 2  ;;  %v3533_v25 = vld [vmem:[#allocation6 + $0x84] sm:$0xf0] }
 0x28c   :  { %v3135_v32 = vor.u32 %v3533_v25, %v3134_v13 }
 0x28d   :  { %v1526_v21 = vadd.f32 %v4158_v29, %v1507_v51  ;;  %v3519_v51 = vld [vmem:[#allocation6 + $0x14] sm:$0xf0]  ;;  %v1660_v16 = vrot.slane %v4202_v60, 6 }
 0x28e   :  { %v3079_v3 = vor.u32 %v3519_v51, %v3078_v33  ;;  %2221 = vmatpush.bf16.msrb.mxu0 %v3215_v37  ;;  %v3528_v33 = vld [vmem:[#allocation6 + $0x64] sm:$0xf]  ;;  %v3120_v51 = vld [vmem:[#allocation6 + $0x68] sm:$0xf0]  ;;  %v3323_v37 = vor.u32 %v3578_v10, %v3320_v6 }
 0x290   :  { %v4160_v42 = vpop.f32.mrf.mxu0  ;;  %v4162_v8 = vpop.f32.mrf.mxu1 }
 0x291   :  { %v1545_v30 = vadd.f32 %v4160_v42, %v1526_v21  ;;  %v4199_v42 = vand.u32 3, %v109_v22 }
 0x292   :  { %v4164_v48 = vpop.f32.mrf.mxu2  ;;  %v4166_v38 = vpop.f32.mrf.mxu3 }
 0x293   :  { %v1510_v12 = vadd.f32 %v4164_v48, %v4175_v28  ;;  %v3086_v48 = vld [vmem:[#allocation6 + $0x20] sm:$0xf]  ;;  %v4205_v61 = vadd.f32 %v4162_v8, %v1545_v30  ;;  %vm129_vm13 = vcmp.eq.s32.totalorder %v4199_v42, 2  ;;  %v3271_v30 = vor.u32 %v3567_v27, %v3270_v62  ;;  %v3248_v62 = vld [vmem:[#allocation6 + $0x168] sm:$0xf0] }
 0x294   :  { %v3087_v19 = vor.u32 %v3521_v39, %v3086_v48  ;;  %v3278_v8 = vld [vmem:[#allocation6 + $0x1a0] sm:$0xf] }
 0x295   :  { %v1529_v53 = vadd.f32 %v4166_v38, %v1510_v12  ;;  %v3279_v43 = vor.u32 %v3569_v11, %v3278_v8  ;;  %v1662_v17 = vrot.slane %v4205_v61, 6  ;;  %v3262_v48 = vld [vmem:[#allocation6 + $0x180] sm:$0xf]  ;;  %v3544_v11 = vld [vmem:[#allocation6 + $0xe4] sm:$0xf] }
 0x296   :  { %2183 = vmatpush.bf16.msra.mxu2 %v3087_v19  ;;  %v3530_v19 = vld [vmem:[#allocation6 + $0x74] sm:$0xf] }
 0x297   :  { %2240 = vmatpush.bf16.msrb.mxu1 %v3279_v43 }
 0x298   :  { %v4171_v26 = vpop.f32.mrf.mxu0  ;;  %v4173_v18 = vpop.f32.mrf.mxu1 }
 0x299   :  { %v1548_v38 = vadd.f32 %v4171_v26, %v1529_v53  ;;  %v3565_v53 = vld [vmem:[#allocation6 + $0x184] sm:$0xf0] }
 0x29a   :  { %v4177_v52 = vpop.f32.mrf.mxu2  ;;  %v4179_v31 = vpop.f32.mrf.mxu3  ;;  %2184 = vmatpush.bf16.msra.mxu2 %v3079_v3  ;;  %v3256_v3 = vld [vmem:[#allocation6 + $0x178] sm:$0xf0] }
 0x29b   :  { %v1512_v45 = vadd.f32 %v4177_v52, %v4175_v28  ;;  %v3070_v28 = vld [vmem:[#allocation6] sm:$0xf]  ;;  %v3517_v52 = vld [vmem:[#allocation6 + $0x4] sm:$0xf0]  ;;  %v4215_v21 = vadd.f32 %v4173_v18, %v1548_v38  ;;  %2241 = vmatpush.bf16.msrb.mxu1 %v3271_v30  ;;  %v3176_v30 = vld [vmem:[#allocation6 + $0xd8] sm:$0xf0] }
 0x29c   :  { %v3071_v12 = vor.u32 %v3517_v52, %v3070_v28  ;;  %v3112_v52 = vld [vmem:[#allocation6 + $0x58] sm:$0xf0] }
 0x29d   :  { %v1531_v58 = vadd.f32 %v4179_v31, %v1512_v45  ;;  %v1666_v36 = vrot.slane %v4215_v21, 6  ;;  %v3562_v45 = vld [vmem:[#allocation6 + $0x174] sm:$0xf] }
 0x29e   :  { %2185 = vmatpush.bf16.msra.mxu2 %v3071_v12  ;;  %v1663_v12 = vsel %vm1659_vm11, %v1660_v16, %v1662_v17 }
 0x2a0   :  { %v4184_v34 = vpop.f32.mrf.mxu0  ;;  %v4186_v40 = vpop.f32.mrf.mxu1 }
 0x2a1   :  { %v1550_v39 = vadd.f32 %v4184_v34, %v1531_v58  ;;  %v3263_v34 = vor.u32 %v3565_v53, %v3262_v48  ;;  %v3576_v58 = vld [vmem:[#allocation6 + $0x1e4] sm:$0xf]  ;;  %v4252_v53 = vand.u32 3, %v107_v41 }
 0x2a2   :  { %v1580_v0 = vpop.f32.mrf.mxu2  ;;  %v1599_v59 = vpop.f32.mrf.mxu3  ;;  %v3540_v41 = vld [vmem:[#allocation6 + $0xc4] sm:$0xf] }
 0x2a3   :  { %v1581_v29 = vadd.f32 %v1580_v0, %v4188_v24  ;;  %v3535_v0 = vld [vmem:[#allocation6 + $0x94] sm:$0xf0]  ;;  %2242 = vmatpush.bf16.msrb.mxu1 %v3263_v34  ;;  %v3168_v34 = vld [vmem:[#allocation6 + $0xc8] sm:$0xf0]  ;;  %vm127_vm14 = vcmp.eq.s32.totalorder %v4252_v53, 2 }
 0x2a4   :  { %v3143_v15 = vor.u32 %v3535_v0, %v3142_v2  ;;  %v3184_v2 = vld [vmem:[#allocation6 + $0xe8] sm:$0xf0]  ;;  %v3526_v0 = vld [vmem:[#allocation6 + $0x54] sm:$0xf] }
 0x2a5   :  { %v1600_v35 = vadd.f32 %v1599_v59, %v1581_v29  ;;  %v3206_v59 = vld [vmem:[#allocation6 + $0x110] sm:$0xf]  ;;  %v3549_v29 = vld [vmem:[#allocation6 + $0x104] sm:$0xf0]  ;;  %v3187_v28 = vor.u32 %v3544_v11, %v3184_v2  ;;  %v3115_v27 = vor.u32 %v3526_v0, %v3112_v52  ;;  %v3096_v11 = vld [vmem:[#allocation6 + $0x38] sm:$0xf0] }
 0x2a6   :  { %2203 = vmatpush.bf16.msra.mxu3 %v3143_v15  ;;  %v3207_v22 = vor.u32 %v3551_v57, %v3206_v59  ;;  %v3199_v9 = vor.u32 %v3549_v29, %v3198_v56  ;;  %v3560_v59 = vld [vmem:[#allocation6 + $0x164] sm:$0xf] }
 0x2a7   :  { %2311 = vmatpush.bf16.msra.mxu1 %v3323_v37  ;;  %v3251_v13 = vor.u32 %v3560_v59, %v3248_v62  ;;  %v3522_v37 = vld [vmem:[#allocation6 + $0x34] sm:$0xf]  ;;  %v3556_v2 = vld [vmem:[#allocation6 + $0x144] sm:$0xf]  ;;  %v3296_v59 = vld [vmem:[#allocation6 + $0x1c8] sm:$0xf0] }
 0x2a8   :  { %v1618_v55 = vpop.f32.mrf.mxu0  ;;  %v1637_v49 = vpop.f32.mrf.mxu1  ;;  %2222 = vmatpush.bf16.msrb.mxu0 %v3207_v22  ;;  %v3312_v22 = vld [vmem:[#allocation6 + $0x1e8] sm:$0xf0]  ;;  %v3572_v52 = vld [vmem:[#allocation6 + $0x1c4] sm:$0xf] }
 0x2a9   :  { %v1619_v14 = vadd.f32 %v1618_v55, %v1600_v35  ;;  %v3131_v55 = vor.u32 %v3530_v19, %v3128_v63  ;;  %v3315_v25 = vor.u32 %v3576_v58, %v3312_v22  ;;  %v3538_v58 = vld [vmem:[#allocation6 + $0xb4] sm:$0xf] }
 0x2aa   :  { %v1582_v7 = vpop.f32.mrf.mxu2  ;;  %v1601_v54 = vpop.f32.mrf.mxu3  ;;  %2204 = vmatpush.bf16.msra.mxu3 %v3135_v32  ;;  %v3524_v32 = vld [vmem:[#allocation6 + $0x44] sm:$0xf] }
 0x2ab   :  { %v1583_v26 = vadd.f32 %v1582_v7, %v4188_v24  ;;  %v4224_v44 = vadd.f32 %v1637_v49, %v1619_v14  ;;  %v3195_v49 = vor.u32 %v3546_v50, %v3192_v47  ;;  %2254 = vmatpush.bf16.msrb.mxu2 %v3131_v55  ;;  %v4231_v14 = vadd.f32 %v4186_v40, %v1550_v39  ;;  %v3104_v39 = vld [vmem:[#allocation6 + $0x48] sm:$0xf0] }
 0x2ac   :  { %2223 = vmatpush.bf16.msrb.mxu0 %v3199_v9  ;;  %v1667_v40 = vsel %vm1659_vm11, %v1662_v17, %v1666_v36  ;;  %v3558_v17 = vld [vmem:[#allocation6 + $0x154] sm:$0xf]  ;;  %v3304_v9 = vld [vmem:[#allocation6 + $0x1d8] sm:$0xf0]  ;;  %v3107_v47 = vor.u32 %v3524_v32, %v3104_v39  ;;  %2312 = vmatpush.bf16.msra.mxu1 %v3315_v25  ;;  %v3520_v25 = vld [vmem:[#allocation6 + $0x24] sm:$0xf] }
 0x2ad   :  { %v1602_v18 = vadd.f32 %v1601_v54, %v1583_v26  ;;  %v3123_v54 = vor.u32 %v3528_v33, %v3120_v51  ;;  %v3259_v26 = vor.u32 %v3562_v45, %v3256_v3  ;;  %v1661_v43 = vrot.slane %v4224_v44, 6  ;;  %v3288_v39 = vld [vmem:[#allocation6 + $0x1b8] sm:$0xf0] }
 0x2ae   :  { %2273 = vmatpush.bf16.msrb.mxu3 %v3195_v49  ;;  %v1649_v19 = vrot.slane %v4231_v14, 6  ;;  %v4258_v55 = vsel %vm129_vm13, %v1667_v40, %v4215_v21  ;;  %v3171_v45 = vor.u32 %v3540_v41, %v3168_v34  ;;  %v3518_v34 = vld [vmem:[#allocation6 + $0x14] sm:$0xf] }
 0x2af   :  { %2255 = vmatpush.bf16.msrb.mxu2 %v3123_v54  ;;  %v1712_v10 = vrot.slane %v4258_v55, 2 }
 0x2b0   :  { %v1620_v46 = vpop.f32.mrf.mxu0  ;;  %v1639_v31 = vpop.f32.mrf.mxu1  ;;  %2292 = vmatpush.bf16.msra.mxu0 %v3259_v26 }
 0x2b1   :  { %v1621_v20 = vadd.f32 %v1620_v46, %v1602_v18  ;;  %v3542_v18 = vld [vmem:[#allocation6 + $0xd4] sm:$0xf]  ;;  %v3240_v46 = vld [vmem:[#allocation6 + $0x158] sm:$0xf0] }
 0x2b2   :  { %v1585_v38 = vpop.f32.mrf.mxu2  ;;  %v1604_v8 = vpop.f32.mrf.mxu3  ;;  %2274 = vmatpush.bf16.msrb.mxu3 %v3187_v28  ;;  %v3179_v48 = vor.u32 %v3542_v18, %v3176_v30  ;;  %v3099_v28 = vor.u32 %v3522_v37, %v3096_v11  ;;  %v3088_v18 = vld [vmem:[#allocation6 + $0x28] sm:$0xf0]  ;;  %v3554_v30 = vld [vmem:[#allocation6 + $0x134] sm:$0xf] }
 0x2b3   :  { %v4227_v35 = vadd.f32 %v1639_v31, %v1621_v20  ;;  %v1586_v7 = vadd.f32 %v1585_v38, %v4188_v24  ;;  %v4248_v31 = vsel %vm4217_vm12, %v1663_v12, %v4205_v61  ;;  %v3574_v20 = vld [vmem:[#allocation6 + $0x1d4] sm:$0xf]  ;;  %v3243_v38 = vor.u32 %v3558_v17, %v3240_v46  ;;  %2256 = vmatpush.bf16.msrb.mxu2 %v3115_v27  ;;  %v3280_v37 = vld [vmem:[#allocation6 + $0x1a8] sm:$0xf0] }
 0x2b4   :  { %2293 = vmatpush.bf16.msra.mxu0 %v3251_v13  ;;  %v3307_v51 = vor.u32 %v3574_v20, %v3304_v9  ;;  %v1707_v3 = vrot.slane %v4248_v31, 2  ;;  %v3299_v27 = vor.u32 %v3572_v52, %v3296_v59  ;;  %v3091_v46 = vor.u32 %v3520_v25, %v3088_v18  ;;  %v3536_v9 = vld [vmem:[#allocation6 + $0xa4] sm:$0xf]  ;;  %v3534_v11 = vld [vmem:[#allocation6 + $0x94] sm:$0xf] }
 0x2b5   :  { %v1664_v15 = vrot.slane %v4227_v35, 6  ;;  %v1605_v57 = vadd.f32 %v1604_v8, %v1586_v7  ;;  %v1680_v7 = vsel %vm1659_vm11, %v1649_v19, %v1660_v16  ;;  %v3208_v59 = vld [vmem:[#allocation6 + $0x118] sm:$0xf0] }
 0x2b6   :  { %2275 = vmatpush.bf16.msrb.mxu3 %v3179_v48  ;;  %2313 = vmatpush.bf16.msra.mxu1 %v3307_v51  ;;  %v4287_v0 = vsel %vm127_vm14, %v1680_v7, %v4202_v60  ;;  %v3160_v60 = vld [vmem:[#allocation6 + $0xb8] sm:$0xf0]  ;;  %v3570_v48 = vld [vmem:[#allocation6 + $0x1b4] sm:$0xf]  ;;  %v3216_v7 = vld [vmem:[#allocation6 + $0x128] sm:$0xf0] }
 0x2b7   :  { %v1665_v50 = vsel %vm1659_vm11, %v1661_v43, %v1664_v15  ;;  %2257 = vmatpush.bf16.msrb.mxu2 %v3107_v47  ;;  %v3163_v13 = vor.u32 %v3538_v58, %v3160_v60  ;;  %v1706_v17 = vrot.slane %v4287_v0, 2  ;;  %v3291_v20 = vor.u32 %v3570_v48, %v3288_v39  ;;  %v3272_v18 = vld [vmem:[#allocation6 + $0x198] sm:$0xf0] }
 0x2b8   :  { %v1623_v56 = vpop.f32.mrf.mxu0  ;;  %v1642_v29 = vpop.f32.mrf.mxu1  ;;  %v4279_v6 = vsel %vm4217_vm12, %v1665_v50, %v4227_v35  ;;  %2294 = vmatpush.bf16.msra.mxu0 %v3243_v38  ;;  %v3152_v50 = vld [vmem:[#allocation6 + $0xa8] sm:$0xf0] }
 0x2b9   :  { %v1624_v63 = vadd.f32 %v1623_v56, %v1605_v57  ;;  %v1710_v12 = vrot.slane %v4279_v6, 2  ;;  %v3155_v41 = vor.u32 %v3536_v9, %v3152_v50  ;;  %v1741_v51 = vpack.c.bf16 %v4279_v6, %v4248_v31  ;;  %v3548_v50 = vld [vmem:[#allocation6 + $0x104] sm:$0xf] }
 0x2ba   :  { %v1587_v61 = vpop.f32.mrf.mxu2  ;;  %v1606_v8 = vpop.f32.mrf.mxu3  ;;  %2276 = vmatpush.bf16.msrb.mxu3 %v3171_v45  ;;  %2314 = vmatpush.bf16.msra.mxu1 %v3299_v27  ;;  %v3552_v45 = vld [vmem:[#allocation6 + $0x124] sm:$0xf]  ;;  %v1708_v4 = vsel %vm324_vm6, %v1706_v17, %v1707_v3  ;;  %v3566_v27 = vld [vmem:[#allocation6 + $0x194] sm:$0xf] }
 0x2bb   :  { %v4263_v49 = vadd.f32 %v1642_v29, %v1624_v63  ;;  %v1588_v33 = vadd.f32 %v1587_v61, %v4188_v24  ;;  %v126_v24 = vand.u32 3, %v3798_v5  ;;  %2258 = vmatpush.bf16.msrb.mxu2 %v3099_v28  ;;  %v3224_v29 = vld [vmem:[#allocation6 + $0x138] sm:$0xf0]  ;;  %v1713_v61 = vsel %vm324_vm6, %v1707_v3, %v1712_v10 }
 0x2bc   :  { %v3227_v63 = vor.u32 %v3554_v30, %v3224_v29  ;;  %v1755_v53 = vunpack.c.h.b16 %v1741_v51  ;;  %v3532_v30 = vld [vmem:[#allocation6 + $0x84] sm:$0xf]  ;;  %v3587_v5 = vld [vmem:[#allocation7 + $0x38] sm:$0xff] }
 0x2bd   :  { %v1668_v54 = vrot.slane %v4263_v49, 6  ;;  %v1607_v16 = vadd.f32 %v1606_v8, %v1588_v33  ;;  %vm4296_vm15 = vcmp.eq.s32.totalorder %v126_v24, 2  ;;  %v3080_v33 = vld [vmem:[#allocation6 + $0x18] sm:$0xf0]  ;;  %v3568_v24 = vld [vmem:[#allocation6 + $0x1a4] sm:$0xf]  ;;  %v1670_v8 = vsel %vm1659_vm11, %v1666_v36, %v1649_v19 }
 0x2be   :  { %2277 = vmatpush.bf16.msrb.mxu3 %v3163_v13  ;;  %2315 = vmatpush.bf16.msra.mxu1 %v3291_v20  ;;  %v3219_v36 = vor.u32 %v3552_v45, %v3216_v7  ;;  %v3072_v19 = vld [vmem:[#allocation6 + $0x8] sm:$0xf0]  ;;  %v3275_v20 = vor.u32 %v3566_v27, %v3272_v18 }
 0x2bf   :  { %v1669_v26 = vsel %vm1659_vm11, %v1664_v15, %v1668_v54  ;;  %v3232_v15 = vld [vmem:[#allocation6 + $0x148] sm:$0xf0]  ;;  %2259 = vmatpush.bf16.msrb.mxu2 %v3091_v46 }
 0x2c0   :  { %v4292_v23 = vsel %vm129_vm13, %v1669_v26, %v4263_v49  ;;  %v1625_v35 = vpop.f32.mrf.mxu0  ;;  %v3235_v62 = vor.u32 %v3556_v2, %v3232_v15  ;;  %v1644_v42 = vpop.f32.mrf.mxu1  ;;  %v3144_v2 = vld [vmem:[#allocation6 + $0x98] sm:$0xf0] }
 0x2c1   :  { %v1714_v40 = vrot.slane %v4292_v23, 2  ;;  %v1626_v57 = vadd.f32 %v1625_v35, %v1607_v16  ;;  %v3083_v16 = vor.u32 %v3518_v34, %v3080_v33  ;;  %v1734_v35 = vsel %vm116_vm7, 0.0, %v1713_v61  ;;  %v3200_v61 = vld [vmem:[#allocation6 + $0x108] sm:$0xf0] }
 0x2c2   :  { %2295 = vmatpush.bf16.msra.mxu0 %v3235_v62  ;;  %2278 = vmatpush.bf16.msrb.mxu3 %v3155_v41  ;;  %v3147_v62 = vor.u32 %v3534_v11, %v3144_v2  ;;  %v3203_v22 = vor.u32 %v3548_v50, %v3200_v61 }
 0x2c3   :  { %v1715_v32 = vsel %vm324_vm6, %v1710_v12, %v1714_v40  ;;  %v1645_v56 = vadd.f32 %v1644_v42, %v1626_v57  ;;  %v1754_v57 = vunpack.c.l.b16 %v1741_v51  ;;  %2260 = vmatpush.bf16.msrb.mxu2 %v3083_v16 }
 0x2c4   :  { %v1735_v47 = vsel %vm116_vm7, 0.0, %v1715_v32  ;;  %v3136_v32 = vld [vmem:[#allocation6 + $0x88] sm:$0xf0] }
 0x2c5   :  { %v1650_v38 = vrot.slane %v1645_v56, 6  ;;  %v1745_v49 = vpack.c.bf16 %v1735_v47, %v1734_v35  ;;  %v3139_v9 = vor.u32 %v3532_v30, %v3136_v32  ;;  %v3564_v47 = vld [vmem:[#allocation6 + $0x184] sm:$0xf]  ;;  %v3594_v32 = vld [vmem:[#allocation7 + $0x70] sm:$0xff] }
 0x2c6   :  { %2296 = vmatpush.bf16.msra.mxu0 %v3227_v63  ;;  %2279 = vmatpush.bf16.msrb.mxu3 %v3147_v62  ;;  %v3581_v62 = vld [vmem:[#allocation7 + $0x8] sm:$0xff] }
 0x2c7   :  { %v1681_v26 = vsel %vm1659_vm11, %v1650_v38, %v1661_v43  ;;  %v1671_v28 = vsel %vm1659_vm11, %v1668_v54, %v1650_v38  ;;  %v3516_v43 = vld [vmem:[#allocation6 + $0x4] sm:$0xf]  ;;  %v3550_v54 = vld [vmem:[#allocation6 + $0x114] sm:$0xf]  ;;  %v1774_v6 = vunpack.c.l.b16 %v1745_v49  ;;  %v1775_v63 = vunpack.c.h.b16 %v1745_v49  ;;  %v3583_v49 = vld [vmem:[#allocation7 + $0x18] sm:$0xff] }
 0x2c8   :  { %v1691_v21 = vsel %vm127_vm14, %v1681_v26, %v4224_v44  ;;  %v3283_v44 = vor.u32 %v3568_v24, %v3280_v37  ;;  %v1697_v58 = vsel %vm4296_vm15, %v1671_v28, %v1645_v56  ;;  %v3075_v13 = vor.u32 %v3516_v43, %v3072_v19 }
 0x2c9   :  { %v1709_v15 = vrot.slane %v1691_v21, 2  ;;  %v1740_v52 = vpack.c.bf16 %v1691_v21, %v4287_v0  ;;  %v3211_v25 = vor.u32 %v3550_v54, %v3208_v59  ;;  %v1696_v56 = vsel %vm4296_vm15, %v1670_v8, %v4231_v14  ;;  %v3264_v14 = vld [vmem:[#allocation6 + $0x188] sm:$0xf0] }
 0x2ca   :  { %2297 = vmatpush.bf16.msra.mxu0 %v3219_v36  ;;  %2316 = vmatpush.bf16.msra.mxu1 %v3283_v44  ;;  %v1718_v39 = vrot.slane %v1697_v58, 2  ;;  %v1716_v38 = vrot.slane %v1696_v56, 2  ;;  %v3267_v33 = vor.u32 %v3564_v47, %v3264_v14  ;;  %v1743_v7 = vpack.c.bf16 %v1697_v58, %v1696_v56  ;;  %v3592_v47 = vld [vmem:[#allocation7 + $0x60] sm:$0xff] }
 0x2cb   :  { %v1752_v60 = vunpack.c.l.b16 %v1740_v52  ;;  %v1753_v42 = vunpack.c.h.b16 %v1740_v52  ;;  %v1711_v31 = vsel %vm324_vm6, %v1709_v15, %v1710_v12  ;;  %2261 = vmatpush.bf16.msrb.mxu2 %v3075_v13  ;;  %2280 = vmatpush.bf16.msrb.mxu3 %v3139_v9  ;;  %v1742_v26 = vpack.c.bf16 %v4292_v23, %v4258_v55  ;;  %v3585_v52 = vld [vmem:[#allocation7 + $0x28] sm:$0xff]  ;;  %v1852_v13 = vld [vmem:[%s4387_s8] sm:$0x3] }
 0x2cc   :  { %v1744_v3 = vpack.c.bf16 %v1711_v31, %v1708_v4  ;;  %v1731_v51 = vsel %vm324_vm6, %v1718_v39, %v1709_v15  ;;  %v1730_v45 = vsel %vm324_vm6, %v1716_v38, %v1706_v17  ;;  %v1719_v24 = vsel %vm324_vm6, %v1714_v40, %v1718_v39  ;;  %v3584_v4 = vld [vmem:[#allocation7 + $0x20] sm:$0xff] }
 0x2cd   :  { %v1760_v29 = vpack.c.b16 %v1754_v57, %v1752_v60  ;;  %v1761_v48 = vpack.c.b16 %v1755_v53, %v1753_v42  ;;  %v1739_v8 = vsel %vm118_vm8, 0.0, %v1731_v51  ;;  %v1717_v16 = vsel %vm324_vm6, %v1712_v10, %v1716_v38  ;;  %v3586_v10 = vld [vmem:[#allocation7 + $0x30] sm:$0xff]  ;;  %v3580_v42 = vld [vmem:[#allocation7] sm:$0xff] }
 0x2ce   :  { %v1772_v12 = vunpack.c.l.b16 %v1744_v3  ;;  %v1773_v46 = vunpack.c.h.b16 %v1744_v3  ;;  %2298 = vmatpush.bf16.msra.mxu0 %v3211_v25  ;;  %2317 = vmatpush.bf16.msra.mxu1 %v3275_v20  ;;  %v1738_v0 = vsel %vm118_vm8, 0.0, %v1730_v45  ;;  %v1746_v17 = vpack.c.bf16 %v1719_v24, %v1717_v16  ;;  %v3582_v57 = vld [vmem:[#allocation7 + $0x10] sm:$0xff]  ;;  %v3595_v3 = vld [vmem:[#allocation7 + $0x78] sm:$0xff] }
 0x2cf   :  { %2186 = vmatmul.bf16.vlgmr.msra.gmra.mxu2 %v1760_v29  ;;  %2205 = vmatmul.bf16.vlgmr.msra.gmra.mxu3 %v1761_v48  ;;  %v1747_v37 = vpack.c.bf16 %v1739_v8, %v1738_v0  ;;  %v1758_v11 = vunpack.c.l.b16 %v1743_v7  ;;  %v1759_v2 = vunpack.c.h.b16 %v1743_v7  ;;  %v1756_v35 = vunpack.c.l.b16 %v1742_v26  ;;  %v3591_v45 = vld [vmem:[#allocation7 + $0x58] sm:$0xff] }
 0x2d0   :  { %v1780_v41 = vpack.c.b16 %v1774_v6, %v1772_v12  ;;  %v1781_v34 = vpack.c.b16 %v1775_v63, %v1773_v46  ;;  %v1757_v40 = vunpack.c.h.b16 %v1742_v26  ;;  %v1776_v28 = vunpack.c.l.b16 %v1746_v17  ;;  %2496 = vmatpush.bf16.msra.mxu2 %v3587_v5  ;;  %2509 = vmatpush.bf16.msra.mxu3 %v3595_v3  ;;  %v3593_v12 = vld [vmem:[#allocation7 + $0x68] sm:$0xff] }
 0x2d1   :  { %v1778_v21 = vunpack.c.l.b16 %v1747_v37  ;;  %v1777_v36 = vunpack.c.h.b16 %v1746_v17  ;;  %v1779_v43 = vunpack.c.h.b16 %v1747_v37  ;;  %v1762_v19 = vpack.c.b16 %v1758_v11, %v1756_v35  ;;  %v3590_v37 = vld [vmem:[#allocation7 + $0x50] sm:$0xff] }
 0x2d2   :  { %2224 = vmatmul.bf16.vlgmr.msrb.gmra.mxu0 %v1780_v41  ;;  %2243 = vmatmul.bf16.vlgmr.msrb.gmra.mxu1 %v1781_v34  ;;  %v1763_v15 = vpack.c.b16 %v1759_v2, %v1757_v40  ;;  %v1854_v25 = vperm.slane %v1852_v13, 0 }
 0x2d3   :  { %2299 = vmatpush.bf16.msra.mxu0 %v3203_v22  ;;  %2318 = vmatpush.bf16.msra.mxu1 %v3267_v33  ;;  %v1782_v55 = vpack.c.b16 %v1778_v21, %v1776_v28  ;;  %v1783_v23 = vpack.c.b16 %v1779_v43, %v1777_v36  ;;  %v3589_v43 = vld [vmem:[#allocation7 + $0x48] sm:$0xff] }
 0x2d4   :  { %2497 = vmatpush.bf16.msra.mxu2 %v3586_v10  ;;  %2510 = vmatpush.bf16.msra.mxu3 %v3594_v32 }
 0x2d8   :  { %2498 = vmatpush.bf16.msra.mxu2 %v3585_v52  ;;  %2511 = vmatpush.bf16.msra.mxu3 %v3593_v12 }
 0x2dc   :  { %2499 = vmatpush.bf16.msra.mxu2 %v3584_v4  ;;  %2512 = vmatpush.bf16.msra.mxu3 %v3592_v47  ;;  %v1855_v4 = vperm.slane %v1852_v13, 1 }
 0x2df   :  { %2191 = vmatmul.bf16.gmra.mxu2 %v1762_v19  ;;  %2210 = vmatmul.bf16.gmra.mxu3 %v1763_v15 }
 0x2e0   :  { %2500 = vmatpush.bf16.msra.mxu2 %v3583_v49  ;;  %2513 = vmatpush.bf16.msra.mxu3 %v3591_v45 }
 0x2e2   :  { %2229 = vmatmul.bf16.gmra.mxu0 %v1782_v55  ;;  %2248 = vmatmul.bf16.gmra.mxu1 %v1783_v23 }
 0x2e4   :  { %2501 = vmatpush.bf16.msra.mxu2 %v3582_v57  ;;  %2514 = vmatpush.bf16.msra.mxu3 %v3590_v37 }
 0x2e8   :  { %2502 = vmatpush.bf16.msra.mxu2 %v3581_v62  ;;  %2515 = vmatpush.bf16.msra.mxu3 %v3589_v43 }
 0x2ec   :  { %2503 = vmatpush.bf16.msra.mxu2 %v3580_v42 }
 0x2ef   :  { %2262 = vmatmul.bf16.vlgmr.msrb.gmra.mxu2 %v1760_v29  ;;  %2281 = vmatmul.bf16.vlgmr.msrb.gmra.mxu3 %v1761_v48 }
 0x2f2   :  { %2300 = vmatmul.bf16.vlgmr.msra.gmra.mxu0 %v1780_v41  ;;  %2319 = vmatmul.bf16.vlgmr.msra.gmra.mxu1 %v1781_v34 }
 0x2ff   :  { %2267 = vmatmul.bf16.gmra.mxu2 %v1762_v19  ;;  %2286 = vmatmul.bf16.gmra.mxu3 %v1763_v15 }
 0x302   :  { %2305 = vmatmul.bf16.gmra.mxu0 %v1782_v55  ;;  %2324 = vmatmul.bf16.gmra.mxu1 %v1783_v23  ;;  %v3588_v55 = vld [vmem:[#allocation7 + $0x40] sm:$0xff] }
 0x303   :  { %2516 = vmatpush.bf16.msra.mxu3 %v3588_v55 }
 0x34f   :  { %v2225_v54 = vpop.f32.mrf.mxu0  ;;  %v2244_v59 = vpop.f32.mrf.mxu1 }
 0x352   :  { %v2187_v53 = vpop.f32.mrf.mxu2  ;;  %v2206_v44 = vpop.f32.mrf.mxu3 }
 0x353   :  { %v2188_v48 = vadd.f32 %v2187_v53, %v1854_v25 }
 0x355   :  { %v2207_v63 = vadd.f32 %v2206_v44, %v2188_v48 }
 0x357   :  { %v2227_v58 = vpop.f32.mrf.mxu0  ;;  %v2246_v60 = vpop.f32.mrf.mxu1  ;;  %v2226_v34 = vadd.f32 %v2225_v54, %v2207_v63 }
 0x359   :  { %v2245_v7 = vadd.f32 %v2244_v59, %v2226_v34 }
 0x35a   :  { %v2189_v31 = vpop.f32.mrf.mxu2  ;;  %v2208_v27 = vpop.f32.mrf.mxu3 }
 0x35b   :  { %v2190_v6 = vadd.f32 %v2189_v31, %v1854_v25  ;;  %v2351_v35 = vrot.slane %v2245_v7, 5 }
 0x35d   :  { %v2209_v20 = vadd.f32 %v2208_v27, %v2190_v6 }
 0x35f   :  { %v2230_v18 = vpop.f32.mrf.mxu0  ;;  %v2249_v30 = vpop.f32.mrf.mxu1  ;;  %v2228_v14 = vadd.f32 %v2227_v58, %v2209_v20 }
 0x361   :  { %v2247_v24 = vadd.f32 %v2246_v60, %v2228_v14  ;;  %v3604_v14 = vld [vmem:[%s4389_s10] ss:$0 sm:$0xff] }
 0x362   :  { %v2192_v56 = vpop.f32.mrf.mxu2  ;;  %v2211_v29 = vpop.f32.mrf.mxu3 }
 0x363   :  { %v2193_v39 = vadd.f32 %v2192_v56, %v1854_v25  ;;  %v2334_v40 = vrot.slane %v2247_v24, 6 }
 0x365   :  { %v2212_v46 = vadd.f32 %v2211_v29, %v2193_v39 }
 0x367   :  { %v2232_v9 = vpop.f32.mrf.mxu0  ;;  %v2251_v50 = vpop.f32.mrf.mxu1  ;;  %v2231_v61 = vadd.f32 %v2230_v18, %v2212_v46 }
 0x369   :  { %v2250_v33 = vadd.f32 %v2249_v30, %v2231_v61 }
 0x36a   :  { %v2194_v38 = vpop.f32.mrf.mxu2  ;;  %v2213_v41 = vpop.f32.mrf.mxu3 }
 0x36b   :  { %v2195_v22 = vadd.f32 %v2194_v38, %v1854_v25  ;;  %v2335_v16 = vrot.slane %v2250_v33, 6 }
 0x36d   :  { %v2214_v51 = vadd.f32 %v2213_v41, %v2195_v22  ;;  %v2336_v21 = vsel %vm1659_vm11, %v2334_v40, %v2335_v16 }
 0x36f   :  { %v2233_v8 = vadd.f32 %v2232_v9, %v2214_v51  ;;  %v2301_v26 = vpop.f32.mrf.mxu0  ;;  %v2320_v17 = vpop.f32.mrf.mxu1 }
 0x371   :  { %v2252_v0 = vadd.f32 %v2251_v50, %v2233_v8 }
 0x372   :  { %v2263_v11 = vpop.f32.mrf.mxu2  ;;  %v2282_v2 = vpop.f32.mrf.mxu3 }
 0x373   :  { %v2345_v28 = vrot.slane %v2252_v0, 5  ;;  %v2264_v59 = vadd.f32 %v2263_v11, %v1855_v4 }
 0x375   :  { %v2356_v36 = vsel %vm2355_vm0, %v2345_v28, %v2351_v35  ;;  %v2283_v60 = vadd.f32 %v2282_v2, %v2264_v59 }
 0x376   :  { %v2360_v19 = vsel %vm2342_vm1, %v2356_v36, %v2336_v21 }
 0x377   :  { %v2362_v15 = vpack.c.bf16 %v2360_v19, %v2360_v19  ;;  %v2303_v23 = vpop.f32.mrf.mxu0  ;;  %v2322_v52 = vpop.f32.mrf.mxu1  ;;  %v2302_v3 = vadd.f32 %v2301_v26, %v2283_v60 }
 0x379   :  { %2504 = vmatmul.bf16.vlgmr.msra.gmra.mxu2 %v2362_v15  ;;  %v2321_v13 = vadd.f32 %v2320_v17, %v2302_v3 }
 0x37a   :  { %v2265_v5 = vpop.f32.mrf.mxu2  ;;  %v2284_v10 = vpop.f32.mrf.mxu3 }
 0x37b   :  { %v2266_v57 = vadd.f32 %v2265_v5, %v1855_v4  ;;  %v2352_v63 = vrot.slane %v2321_v13, 5 }
 0x37d   :  { %v2285_v42 = vadd.f32 %v2284_v10, %v2266_v57 }
 0x37f   :  { %v2306_v44 = vpop.f32.mrf.mxu0  ;;  %v2325_v58 = vpop.f32.mrf.mxu1  ;;  %v2304_v25 = vadd.f32 %v2303_v23, %v2285_v42 }
 0x381   :  { %v2323_v48 = vadd.f32 %v2322_v52, %v2304_v25 }
 0x382   :  { %v2268_v49 = vpop.f32.mrf.mxu2  ;;  %v2287_v54 = vpop.f32.mrf.mxu3 }
 0x383   :  { %v2269_v53 = vadd.f32 %v2268_v49, %v1855_v4  ;;  %v2337_v20 = vrot.slane %v2323_v48, 6 }
 0x385   :  { %v2288_v62 = vadd.f32 %v2287_v54, %v2269_v53 }
 0x387   :  { %v2307_v31 = vadd.f32 %v2306_v44, %v2288_v62  ;;  %v2308_v29 = vpop.f32.mrf.mxu0  ;;  %v2327_v39 = vpop.f32.mrf.mxu1 }
 0x389   :  { %v2326_v32 = vadd.f32 %v2325_v58, %v2307_v31 }
 0x38a   :  { %v2270_v27 = vpop.f32.mrf.mxu2  ;;  %v2289_v30 = vpop.f32.mrf.mxu3 }
 0x38b   :  { %v2271_v18 = vadd.f32 %v2270_v27, %v1855_v4  ;;  %v2338_v12 = vrot.slane %v2326_v32, 6 }
 0x38d   :  { %v2290_v56 = vadd.f32 %v2289_v30, %v2271_v18  ;;  %v2339_v50 = vsel %vm1659_vm11, %v2337_v20, %v2338_v12 }
 0x38f   :  { %v2309_v6 = vadd.f32 %v2308_v29, %v2290_v56 }
 0x391   :  { %v2328_v46 = vadd.f32 %v2327_v39, %v2309_v6 }
 0x393   :  { %v2346_v9 = vrot.slane %v2328_v46, 5 }
 0x395   :  { %v2357_v61 = vsel %vm2355_vm0, %v2346_v9, %v2352_v63 }
 0x396   :  { %v2361_v47 = vsel %vm2342_vm1, %v2357_v61, %v2339_v50 }
 0x397   :  { %v2363_v38 = vpack.c.bf16 %v2361_v47, %v2361_v47 }
 0x399   :  { %2517 = vmatmul.bf16.vlgmr.msra.gmra.mxu3 %v2363_v38 }
 0x3fc   :  { %v2505_v41 = vpop.f32.mrf.mxu2 }
 0x3fd   :  { %v2506_v22 = vadd.f32 %v3604_v14, %v2505_v41 }
 0x404   :  { %v2507_v34 = vpop.f32.mrf.mxu2 }
 0x41c   :  { %v2518_v33 = vpop.f32.mrf.mxu3 }
 0x41d   :  { %v2519_v51 = vadd.f32 %v2518_v33, %v2506_v22 }
 0x41f   :  { %2522 = vmax.xlane.f32.xlu1 %v2519_v51 }
 0x424   :  { %v2520_v45 = vpop.f32.mrf.mxu3 }
 0x492   :  { %v2523_v7 = vpop.xlane.xlu1 %2522 }
 0x493   :  { %v2524_v24 = vsub.f32 %v2519_v51, %v2523_v7 }
 0x495   :  { %v2525_v8 = vmul.f32 1.442695, %v2524_v24 }
 0x497   :  { %3605 = vpow2.f32 %v2525_v8 }
 0x49d   :  { %v3606_v26 = vpop.eup %3605 }
 0x49e   :  { %2527 = vadd.xlane.f32.xlu1 %v3606_v26 }
 0x511   :  { %v2528_v1 = vpop.xlane.xlu1 %2527 }
 0x512   :  { %3607 = vrcp.f32 %v2528_v1  ;;  %v2540_v37 = vand.u32 2147483648, %v2528_v1  ;;  %v2538_v2 = vand.u32 2147483647, %v2528_v1  ;;  %vm2534_vm3 = vweird.f32 %v2528_v1 }
 0x514   :  { %v2541_v40 = vor.u32 1.1754944e-38, %v2540_v37  ;;  %vm2539_vm5 = vcmp.eq.f32.partialorder %v2538_v2, 8.507059e+37 }
 0x518   :  { %v3608_v16 = vpop.eup %3607 }
 0x519   :  { %v2530_v0 = vmul.f32 %v3608_v16, %v2528_v1  ;;  %vm2535_vm2 = vweird.f32 %v3608_v16 }
 0x51a   :  { %vm2536_vm4 = vmor %vm2534_vm3, %vm2535_vm2 }
 0x51b   :  { %v2531_v17 = vsub.f32 1.0, %v2530_v0 }
 0x51d   :  { %v2532_v11 = vmul.f32 %v3608_v16, %v2531_v17 }
 0x51f   :  { %v2533_v35 = vadd.f32 %v3608_v16, %v2532_v11 }
 0x521   :  { %v2537_v28 = vsel %vm2536_vm4, %v3608_v16, %v2533_v35 }
 0x522   :  { %v2542_v21 = vsel %vm2539_vm5, %v2541_v40, %v2537_v28 }
 0x523   :  { %v2543_v36 = vmul.f32 %v3606_v26, %v2542_v21 }
 0x525   :  { %2544 = vst [vmem:[%s4390_s11] sm:$0xff] %v2543_v36 }
 0x526   :  { %2549 = vsyncpa [#allocation3], 1 }
 0x527   :  { %2550 = vsyncpa [#allocation5], 1 }
 0x528   :  { %2551 = vsyncpa [#allocation8], 1 }

</bundles_post_ra>
